<compile_context>
chip_gen: v7x
topology: tpu7x:2x2x1
jax: 0.10.0
libtpu: 0.0.40
codegen_flags: <defaults>
</compile_context>

<pallas_src>
import functools
import math

import jax
import jax.numpy as jnp
from jax import lax
from jax.experimental import pallas as pl
from jax.experimental.pallas import tpu as pltpu

HALO = 8  # halo rows on each side of the cond window (>= 2 needed; 8 keeps sublane alignment)


def _round_up(x, m):
    return ((x + m - 1) // m) * m


def _gelu(x):
    # tanh-approximate GELU (EUP tanh + a few VPU ops).
    c = 0.7978845608028654  # sqrt(2/pi)
    return 0.5 * x * (1.0 + jnp.tanh(c * (x + 0.044715 * x * x * x)))


def _shift_rows(x, direction):
    """Shift rows by one with zero fill.
    direction=+1 -> result[t] = x[t-1] (row 0 zero);
    direction=-1 -> result[t] = x[t+1] (last row zero)."""
    zero = jnp.zeros((1, x.shape[1]), x.dtype)
    if direction > 0:
        return jnp.concatenate([zero, x[:-1, :]], axis=0)
    return jnp.concatenate([x[1:, :], zero], axis=0)


def _conv3(x_bf, w_ref, b_ref):
    """Conv1d(k=3, padding=1) along axis 0 as three per-tap MXU matmuls.
    x_bf: (L, Ci) bf16; w_ref: (3, Ci, Co) bf16, tap k pairs with x[t+k-1];
    b_ref: (1, Co) f32.  f32 accumulation."""
    x_prev = _shift_rows(x_bf, +1)   # x[t-1]
    x_next = _shift_rows(x_bf, -1)   # x[t+1]
    acc = jnp.dot(x_prev, w_ref[0], preferred_element_type=jnp.float32)
    acc = acc + jnp.dot(x_bf, w_ref[1], preferred_element_type=jnp.float32)
    acc = acc + jnp.dot(x_next, w_ref[2], preferred_element_type=jnp.float32)
    return acc + b_ref[...]


# ---------------------------------------------------------------------------
# Pallas kernel: one (batch, time-tile) grid point
# ---------------------------------------------------------------------------
def _film_kernel(t_true, t_tile, cin, cin_full,
                 cond_hbm, x_ref, emb_ref, lng_ref, lnb_ref,
                 w1_ref, b1_ref, w2_ref, b2_ref,
                 out_ref, cbuf, sem):
    b = pl.program_id(0)
    ti = pl.program_id(1)
    nt = pl.num_programs(1)
    L = cbuf.shape[1]            # t_tile + 2*HALO
    cin_p = cbuf.shape[2]
    cout_p = x_ref.shape[2]
    slot = ti & 1

    # ---- manual double-buffered DMA of the halo'd cond window -------------
    def cond_copy(tile_idx, slot_idx):
        return pltpu.make_async_copy(
            cond_hbm.at[b, pl.ds(tile_idx * t_tile, L), :],
            cbuf.at[slot_idx],
            sem.at[slot_idx])

    @pl.when(ti == 0)            # prime the pipeline at the start of each batch
    def _():
        cond_copy(ti, slot).start()

    cond_copy(ti, slot).wait()   # window for the current tile

    @pl.when(ti + 1 < nt)        # prefetch the next tile's window
    def _():
        cond_copy(ti + 1, 1 - slot).start()

    # global-row validity (rows outside [0, T) emulate torch's conv zero pad)
    g0 = ti * t_tile - HALO
    row = lax.broadcasted_iota(jnp.int32, (L, 1), 0) + g0
    valid = jnp.logical_and(row >= 0, row < t_true)

    cond = cbuf[slot].astype(jnp.float32)                      # (L, Cin_p)

    # ---- NCTLayerNorm over the true `cin` channels (biased var, eps 1e-5) --
    if cin_full:
        mu = jnp.mean(cond, axis=-1, keepdims=True)
        d = cond - mu
        var = jnp.mean(d * d, axis=-1, keepdims=True)
    else:
        lane = lax.broadcasted_iota(jnp.int32, (L, cin_p), 1)
        cmask = lane < cin
        xm = jnp.where(cmask, cond, 0.0)
        mu = jnp.sum(xm, axis=-1, keepdims=True) * (1.0 / cin)
        d = jnp.where(cmask, cond - mu, 0.0)
        var = jnp.sum(d * d, axis=-1, keepdims=True) * (1.0 / cin)
    ln = d * lax.rsqrt(var + 1e-5) * lng_ref[...] + lnb_ref[...]
    ln = jnp.where(valid, ln, 0.0).astype(jnp.bfloat16)

    # ---- in_layer: Conv1d(cin -> cout, k=3, pad=1) + GELU + embedding ------
    h = _conv3(ln, w1_ref, b1_ref)                             # (L, Cout_p) f32
    h = _gelu(h) + emb_ref[0]
    h = jnp.where(valid, h, 0.0).astype(jnp.bfloat16)

    # ---- out_layer: Conv1d(cout -> 2*cout), alpha|beta packed on lanes -----
    ab = _conv3(h, w2_ref, b2_ref)                             # (L, 2*Cout_p) f32
    ab = ab[HALO:HALO + t_tile]                                # aligned central slice
    alpha = ab[:, :cout_p]
    beta = ab[:, cout_p:]

    x = x_ref[0].astype(jnp.float32)                           # (t_tile, Cout_p)
    out_ref[0] = (x * alpha + beta).astype(out_ref.dtype)


# ---------------------------------------------------------------------------
# wrapper
# ---------------------------------------------------------------------------
def film_forward(inputs_nct, cond_nct, t, labels, params, *, max_t_tile=1024):
    """inputs: (N, Cout, T), cond: (N, Cin, T), t: (N,), labels: (N,) or None.
    Returns inputs * alpha + beta, shape (N, Cout, T)."""
    N, Cout, T = inputs_nct.shape
    _, Cin, Tc = cond_nct.shape
    assert Tc == T and Cout % 2 == 0
    half = Cout // 2

    # --- timestep (+ label) embedding: tiny per-batch vectors, done in JAX ---
    freqs = jnp.exp(-math.log(10.0) * jnp.arange(half, dtype=jnp.float32) / half)
    args = t.astype(jnp.float32)[:, None] * freqs[None, :]
    emb = jnp.concatenate([jnp.cos(args), jnp.sin(args)], axis=-1)       # (N, Cout)
    if labels is not None:
        emb = emb + params["label_emb"][labels]

    cin_p = _round_up(Cin, 128)
    cout_p = _round_up(Cout, 128)

    # --- time-tile size from a VMEM budget (safe on v7x's 64 MiB) -----------
    w_bytes = (3 * cin_p * cout_p + 6 * cout_p * cout_p) * 2     # bf16 weights
    row_bytes = 12 * cin_p + 34 * cout_p                         # blocks + live temps / row (crude)
    budget = 24 * 2 ** 20
    rows = max(8, (budget - 2 * w_bytes) // row_bytes)
    t_tile = int(min(max_t_tile, rows, _round_up(T, 8)))
    t_tile = max(8, (t_tile // 8) * 8)
    nt = -(-T // t_tile)
    t_tile = _round_up(-(-T // nt), 8)                           # rebalance: waste < 8 rows/tile
    t_pad = nt * t_tile
    L = t_tile + 2 * HALO
    vmem_limit = int(min(96 * 2 ** 20,
                         max(32 * 2 ** 20, 2 * w_bytes + 3 * L * row_bytes)))

    # --- channels-last, lane-dense, bf16 inputs ------------------------------
    cond = jnp.transpose(cond_nct, (0, 2, 1)).astype(jnp.bfloat16)
    cond = jnp.pad(cond, ((0, 0), (HALO, HALO + t_pad - T), (0, cin_p - Cin)))
    x_in = jnp.transpose(inputs_nct, (0, 2, 1)).astype(jnp.bfloat16)
    x_in = jnp.pad(x_in, ((0, 0), (0, t_pad - T), (0, cout_p - Cout)))
    emb_p = jnp.pad(emb.astype(jnp.float32), ((0, 0), (0, cout_p - Cout)))
    emb_p = emb_p.reshape(N, 1, cout_p)

    def pad_row(v, c):                       # (C,) -> (1, c) f32, zero padded
        return jnp.pad(v.astype(jnp.float32), (0, c - v.shape[0])).reshape(1, c)

    def conv_w(w, ci_p, co_p):               # torch (Co, Ci, 3) -> (3, ci_p, co_p) bf16
        co, ci, _ = w.shape
        wt = jnp.transpose(w, (2, 1, 0)).astype(jnp.float32)     # (3, Ci, Co)
        wt = jnp.pad(wt, ((0, 0), (0, ci_p - ci), (0, co_p - co)))
        return wt.astype(jnp.bfloat16)

    lng = pad_row(params["ln_g"], cin_p)
    lnb = pad_row(params["ln_b"], cin_p)
    w1 = conv_w(params["w_in"], cin_p, cout_p)                   # (3, Cin_p, Cout_p)
    b1 = pad_row(params["b_in"], cout_p)
    # out_layer (2*Cout, Cout, 3): split into alpha / beta halves, pack on lanes
    w_a = conv_w(params["w_out"][:Cout], cout_p, cout_p)
    w_b = conv_w(params["w_out"][Cout:], cout_p, cout_p)
    w2 = jnp.concatenate([w_a, w_b], axis=2)                     # (3, Cout_p, 2*Cout_p)
    b2 = jnp.concatenate([pad_row(params["b_out"][:Cout], cout_p),
                          pad_row(params["b_out"][Cout:], cout_p)], axis=1)

    def const_spec(a):                       # whole-array block, constant index
        nd = a.ndim
        return pl.BlockSpec(a.shape, lambda b, i, _nd=nd: (0,) * _nd)

    kernel = functools.partial(_film_kernel, T, t_tile, Cin, Cin == cin_p)

    out = pl.pallas_call(
        kernel,
        out_shape=jax.ShapeDtypeStruct((N, t_pad, cout_p), jnp.float32),
        grid=(N, nt),
        in_specs=[
            pl.BlockSpec(memory_space=pl.ANY),                        # cond (manual halo'd DMA)
            pl.BlockSpec((1, t_tile, cout_p), lambda b, i: (b, i, 0)),  # inputs
            pl.BlockSpec((1, 1, cout_p), lambda b, i: (b, 0, 0)),       # embedding
            const_spec(lng), const_spec(lnb),
            const_spec(w1), const_spec(b1),
            const_spec(w2), const_spec(b2),
        ],
        out_specs=pl.BlockSpec((1, t_tile, cout_p), lambda b, i: (b, i, 0)),
        scratch_shapes=[pltpu.VMEM((2, L, cin_p), jnp.bfloat16),      # cond window, 2 slots
                        pltpu.SemaphoreType.DMA((2,))],
        compiler_params=pltpu.CompilerParams(
            # batch axis megacore-parallel; time axis sequential so the
            # cross-iteration cond prefetch is well defined per core.
            dimension_semantics=("parallel", "arbitrary"),
            vmem_limit_bytes=vmem_limit,
        ),
    )(cond, x_in, emb_p, lng, lnb, w1, b1, w2, b2)

    out = out[:, :T, :Cout]
    return jnp.transpose(out, (0, 2, 1))          # back to (N, Cout, T)


# ---------------------------------------------------------------------------
# pure-JAX reference (same tanh-GELU), for an in-script correctness check
# ---------------------------------------------------------------------------
def film_reference(inputs, cond, t, labels, params):
    N, Cout, T = inputs.shape
    half = Cout // 2
    freqs = jnp.exp(-math.log(10.0) * jnp.arange(half, dtype=jnp.float32) / half)
    args = t.astype(jnp.float32)[:, None] * freqs[None, :]
    emb = jnp.concatenate([jnp.cos(args), jnp.sin(args)], axis=-1)
    if labels is not None:
        emb = emb + params["label_emb"][labels]

    x = jnp.transpose(cond, (0, 2, 1)).astype(jnp.float32)
    mu = jnp.mean(x, axis=-1, keepdims=True)
    var = jnp.mean((x - mu) ** 2, axis=-1, keepdims=True)
    x = (x - mu) * lax.rsqrt(var + 1e-5) * params["ln_g"] + params["ln_b"]
    x = jnp.transpose(x, (0, 2, 1))

    def conv1d(z, w, b):
        y = lax.conv_general_dilated(z, w, window_strides=(1,), padding=((1, 1),),
                                     dimension_numbers=("NCH", "OIH", "NCH"))
        return y + b[None, :, None]

    h = _gelu(conv1d(x, params["w_in"], params["b_in"]))
    h = h + emb[:, :, None]
    ab = conv1d(h, params["w_out"], params["b_out"])
    alpha, beta = ab[:, :Cout, :], ab[:, Cout:, :]
    return inputs * alpha + beta


# ---------------------------------------------------------------------------
# main
# ---------------------------------------------------------------------------
if __name__ == "__main__":
    N, Cin, Cout, T = 2, 4, 8, 16
    num_labels = 10

    key = jax.random.PRNGKey(0)
    ks = jax.random.split(key, 12)

    def u(k, shape, s=0.2):
        return jax.random.uniform(k, shape, jnp.float32, -s, s)

    params = {
        "ln_g": 1.0 + u(ks[0], (Cin,), 0.1),
        "ln_b": u(ks[1], (Cin,), 0.1),
        "w_in": u(ks[2], (Cout, Cin, 3)),
        "b_in": u(ks[3], (Cout,)),
        "w_out": u(ks[4], (2 * Cout, Cout, 3)),
        "b_out": u(ks[5], (2 * Cout,)),
        "label_emb": u(ks[6], (num_labels, Cout), 0.5),
    }
    inputs = jax.random.normal(ks[7], (N, Cout, T), jnp.float32)
    cond = jax.random.normal(ks[8], (N, Cin, T), jnp.float32)
    t = jax.random.uniform(ks[9], (N,), jnp.float32)
    labels = jax.random.randint(ks[10], (N,), 0, num_labels)

    out = film_forward(inputs, cond, t, labels, params)
    out = jax.block_until_ready(out)
    assert out.shape == (N, Cout, T), out.shape
    assert bool(jnp.all(jnp.isfinite(out)))

    ref = film_reference(inputs, cond, t, labels, params)
    err = float(jnp.max(jnp.abs(out - ref)))
    assert err < 1e-1, f"max abs err too large: {err}"   # bf16 inputs + bf16 MXU operands

    print("KERNEL_OK")
</pallas_src>

<mosaic_0001>
module attributes {stable_mosaic.version = 11 : i64} {
  func.func @_film_kernel(%arg0: i32, %arg1: i32, %arg2: memref<2x32x128xbf16, #tpu.memory_space<any>>, %arg3: memref<1x16x128xbf16, #tpu.memory_space<vmem>>, %arg4: memref<1x1x128xf32, #tpu.memory_space<vmem>>, %arg5: memref<1x128xf32, #tpu.memory_space<vmem>>, %arg6: memref<1x128xf32, #tpu.memory_space<vmem>>, %arg7: memref<3x128x128xbf16, #tpu.memory_space<vmem>>, %arg8: memref<1x128xf32, #tpu.memory_space<vmem>>, %arg9: memref<3x128x256xbf16, #tpu.memory_space<vmem>>, %arg10: memref<1x256xf32, #tpu.memory_space<vmem>>, %arg11: memref<1x16x128xf32, #tpu.memory_space<vmem>>, %arg12: memref<2x32x128xbf16, #tpu.memory_space<vmem>>, %arg13: memref<2x!tpu.dma_semaphore, #tpu.memory_space<semaphore_mem>>) attributes {dimension_semantics = [#tpu.dimension_semantics<parallel>, #tpu.dimension_semantics<arbitrary>], iteration_bounds = array<i64: 2, 1>, scalar_prefetch = 0 : i64, scratch_operands = 2 : i64, tpu.core_type = #tpu.core_type<tc>, window_params = [{}, {transform_indices = @transform_1, window_bounds = array<i64: 1, 16, 128>}, {transform_indices = @transform_2, window_bounds = array<i64: 1, 1, 128>}, {pipeline_mode = #tpu.pipeline_mode<synchronous>, transform_indices = @transform_3, window_bounds = array<i64: 1, 128>}, {pipeline_mode = #tpu.pipeline_mode<synchronous>, transform_indices = @transform_4, window_bounds = array<i64: 1, 128>}, {pipeline_mode = #tpu.pipeline_mode<synchronous>, transform_indices = @transform_5, window_bounds = array<i64: 3, 128, 128>}, {pipeline_mode = #tpu.pipeline_mode<synchronous>, transform_indices = @transform_6, window_bounds = array<i64: 1, 128>}, {pipeline_mode = #tpu.pipeline_mode<synchronous>, transform_indices = @transform_7, window_bounds = array<i64: 3, 128, 256>}, {pipeline_mode = #tpu.pipeline_mode<synchronous>, transform_indices = @transform_8, window_bounds = array<i64: 1, 256>}, {transform_indices = @transform_9, window_bounds = array<i64: 1, 16, 128>}]} {
    %c1_i32 = arith.constant 1 : i32
    %0 = arith.andi %arg1, %c1_i32 : i32
    %c0_i32 = arith.constant 0 : i32
    %1 = arith.cmpi eq, %arg1, %c0_i32 : i32
    %2 = arith.extui %1 : i1 to i32
    %c0_i32_0 = arith.constant 0 : i32
    %3 = arith.cmpi ne, %2, %c0_i32_0 : i32
    scf.if %3 {
      %c16_i32_66 = arith.constant 16 : i32
      %136 = arith.muli %arg1, %c16_i32_66 : i32
      %c0_i32_67 = arith.constant 0 : i32
      %137 = tpu.memref_slice %arg2[%arg0, %136, %c0_i32_67] : memref<2x32x128xbf16, #tpu.memory_space<any>> -> memref<1x32x128xbf16, #tpu.memory_space<any>>
      %138 = tpu.memref_squeeze %137 : memref<1x32x128xbf16, #tpu.memory_space<any>> -> memref<32x128xbf16, #tpu.memory_space<any>>
      %c0_i32_68 = arith.constant 0 : i32
      %c0_i32_69 = arith.constant 0 : i32
      %139 = tpu.memref_slice %arg12[%0, %c0_i32_68, %c0_i32_69] : memref<2x32x128xbf16, #tpu.memory_space<vmem>> -> memref<1x32x128xbf16, #tpu.memory_space<vmem>>
      %140 = tpu.memref_squeeze %139 : memref<1x32x128xbf16, #tpu.memory_space<vmem>> -> memref<32x128xbf16, #tpu.memory_space<vmem>>
      %141 = tpu.memref_slice %arg13[%0] : memref<2x!tpu.dma_semaphore, #tpu.memory_space<semaphore_mem>> -> memref<1x!tpu.dma_semaphore, #tpu.memory_space<semaphore_mem>>
      %142 = tpu.memref_squeeze %141 : memref<1x!tpu.dma_semaphore, #tpu.memory_space<semaphore_mem>> -> memref<!tpu.dma_semaphore, #tpu.memory_space<semaphore_mem>>
      tpu.enqueue_dma source(%138 : memref<32x128xbf16, #tpu.memory_space<any>>) target(%140 : memref<32x128xbf16, #tpu.memory_space<vmem>>) target_semaphore(%142 : memref<!tpu.dma_semaphore, #tpu.memory_space<semaphore_mem>>)
    } else {
    }
    %c16_i32 = arith.constant 16 : i32
    %4 = arith.muli %arg1, %c16_i32 : i32
    %c0_i32_1 = arith.constant 0 : i32
    %5 = tpu.memref_slice %arg2[%arg0, %4, %c0_i32_1] : memref<2x32x128xbf16, #tpu.memory_space<any>> -> memref<1x32x128xbf16, #tpu.memory_space<any>>
    %6 = tpu.memref_squeeze %5 : memref<1x32x128xbf16, #tpu.memory_space<any>> -> memref<32x128xbf16, #tpu.memory_space<any>>
    %c0_i32_2 = arith.constant 0 : i32
    %c0_i32_3 = arith.constant 0 : i32
    %7 = tpu.memref_slice %arg12[%0, %c0_i32_2, %c0_i32_3] : memref<2x32x128xbf16, #tpu.memory_space<vmem>> -> memref<1x32x128xbf16, #tpu.memory_space<vmem>>
    %8 = tpu.memref_squeeze %7 : memref<1x32x128xbf16, #tpu.memory_space<vmem>> -> memref<32x128xbf16, #tpu.memory_space<vmem>>
    %9 = tpu.memref_slice %arg13[%0] : memref<2x!tpu.dma_semaphore, #tpu.memory_space<semaphore_mem>> -> memref<1x!tpu.dma_semaphore, #tpu.memory_space<semaphore_mem>>
    %10 = tpu.memref_squeeze %9 : memref<1x!tpu.dma_semaphore, #tpu.memory_space<semaphore_mem>> -> memref<!tpu.dma_semaphore, #tpu.memory_space<semaphore_mem>>
    tpu.wait_dma2 semaphore(%10 : memref<!tpu.dma_semaphore, #tpu.memory_space<semaphore_mem>>) src(%6 : memref<32x128xbf16, #tpu.memory_space<any>>) dst(%8 : memref<32x128xbf16, #tpu.memory_space<vmem>>)
    %c1_i32_4 = arith.constant 1 : i32
    %11 = arith.addi %arg1, %c1_i32_4 : i32
    %c1_i32_5 = arith.constant 1 : i32
    %12 = arith.cmpi slt, %11, %c1_i32_5 : i32
    %13 = arith.extui %12 : i1 to i32
    %c0_i32_6 = arith.constant 0 : i32
    %14 = arith.cmpi ne, %13, %c0_i32_6 : i32
    scf.if %14 {
      %c1_i32_66 = arith.constant 1 : i32
      %136 = arith.addi %arg1, %c1_i32_66 : i32
      %c1_i32_67 = arith.constant 1 : i32
      %137 = arith.subi %c1_i32_67, %0 : i32
      %c16_i32_68 = arith.constant 16 : i32
      %138 = arith.muli %136, %c16_i32_68 : i32
      %c0_i32_69 = arith.constant 0 : i32
      %139 = tpu.memref_slice %arg2[%arg0, %138, %c0_i32_69] : memref<2x32x128xbf16, #tpu.memory_space<any>> -> memref<1x32x128xbf16, #tpu.memory_space<any>>
      %140 = tpu.memref_squeeze %139 : memref<1x32x128xbf16, #tpu.memory_space<any>> -> memref<32x128xbf16, #tpu.memory_space<any>>
      %c0_i32_70 = arith.constant 0 : i32
      %c0_i32_71 = arith.constant 0 : i32
      %141 = tpu.memref_slice %arg12[%137, %c0_i32_70, %c0_i32_71] : memref<2x32x128xbf16, #tpu.memory_space<vmem>> -> memref<1x32x128xbf16, #tpu.memory_space<vmem>>
      %142 = tpu.memref_squeeze %141 : memref<1x32x128xbf16, #tpu.memory_space<vmem>> -> memref<32x128xbf16, #tpu.memory_space<vmem>>
      %143 = tpu.memref_slice %arg13[%137] : memref<2x!tpu.dma_semaphore, #tpu.memory_space<semaphore_mem>> -> memref<1x!tpu.dma_semaphore, #tpu.memory_space<semaphore_mem>>
      %144 = tpu.memref_squeeze %143 : memref<1x!tpu.dma_semaphore, #tpu.memory_space<semaphore_mem>> -> memref<!tpu.dma_semaphore, #tpu.memory_space<semaphore_mem>>
      tpu.enqueue_dma source(%140 : memref<32x128xbf16, #tpu.memory_space<any>>) target(%142 : memref<32x128xbf16, #tpu.memory_space<vmem>>) target_semaphore(%144 : memref<!tpu.dma_semaphore, #tpu.memory_space<semaphore_mem>>)
    } else {
    }
    %c16_i32_7 = arith.constant 16 : i32
    %15 = arith.muli %arg1, %c16_i32_7 : i32
    %c8_i32 = arith.constant 8 : i32
    %16 = arith.subi %15, %c8_i32 : i32
    %17 = tpu.iota {dimensions = array<i32: 0>} : vector<32x1xi32>
    %18 = vector.broadcast %16 : i32 to vector<32x1xi32>
    %19 = arith.addi %17, %18 : vector<32x1xi32>
    %c0_i32_8 = arith.constant 0 : i32
    %20 = vector.broadcast %c0_i32_8 : i32 to vector<32x1xi32>
    %21 = arith.cmpi sge, %19, %20 : vector<32x1xi32>
    %c16_i32_9 = arith.constant 16 : i32
    %22 = vector.broadcast %c16_i32_9 : i32 to vector<32x1xi32>
    %23 = arith.cmpi slt, %19, %22 : vector<32x1xi32>
    %24 = arith.andi %21, %23 : vector<32x1xi1>
    %25 = arith.index_cast %0 : i32 to index
    %c0 = arith.constant 0 : index
    %c0_10 = arith.constant 0 : index
    %26 = vector.load %arg12[%25, %c0, %c0_10] : memref<2x32x128xbf16, #tpu.memory_space<vmem>>, vector<1x32x128xbf16>
    %27 = vector.shape_cast %26 : vector<1x32x128xbf16> to vector<32x128xbf16>
    %28 = arith.extf %27 : vector<32x128xbf16> to vector<32x128xf32>
    %29 = tpu.iota {dimensions = array<i32: 1>} : vector<32x128xi32>
    %c4_i32 = arith.constant 4 : i32
    %30 = vector.broadcast %c4_i32 : i32 to vector<32x128xi32>
    %31 = arith.cmpi slt, %29, %30 : vector<32x128xi32>
    %cst = arith.constant 0.000000e+00 : f32
    %32 = vector.broadcast %cst : f32 to vector<32x128xf32>
    %33 = arith.select %31, %28, %32 : vector<32x128xi1>, vector<32x128xf32>
    %cst_11 = arith.constant dense<0.000000e+00> : vector<32xf32>
    %34 = vector.multi_reduction <add>, %33, %cst_11 [1] : vector<32x128xf32> to vector<32xf32>
    %35 = vector.shape_cast %34 : vector<32xf32> to vector<32x1xf32>
    %cst_12 = arith.constant 2.500000e-01 : f32
    %36 = vector.broadcast %cst_12 : f32 to vector<32x1xf32>
    %37 = arith.mulf %35, %36 : vector<32x1xf32>
    %38 = vector.broadcast %37 : vector<32x1xf32> to vector<32x128xf32>
    %39 = arith.subf %28, %38 : vector<32x128xf32>
    %cst_13 = arith.constant 0.000000e+00 : f32
    %40 = vector.broadcast %cst_13 : f32 to vector<32x128xf32>
    %41 = arith.select %31, %39, %40 : vector<32x128xi1>, vector<32x128xf32>
    %42 = arith.mulf %41, %41 : vector<32x128xf32>
    %cst_14 = arith.constant dense<0.000000e+00> : vector<32xf32>
    %43 = vector.multi_reduction <add>, %42, %cst_14 [1] : vector<32x128xf32> to vector<32xf32>
    %44 = vector.shape_cast %43 : vector<32xf32> to vector<32x1xf32>
    %cst_15 = arith.constant 2.500000e-01 : f32
    %45 = vector.broadcast %cst_15 : f32 to vector<32x1xf32>
    %46 = arith.mulf %44, %45 : vector<32x1xf32>
    %cst_16 = arith.constant 9.99999974E-6 : f32
    %47 = vector.broadcast %cst_16 : f32 to vector<32x1xf32>
    %48 = arith.addf %46, %47 : vector<32x1xf32>
    %49 = math.rsqrt %48 : vector<32x1xf32>
    %50 = vector.broadcast %49 : vector<32x1xf32> to vector<32x128xf32>
    %51 = arith.mulf %41, %50 : vector<32x128xf32>
    %c0_17 = arith.constant 0 : index
    %c0_18 = arith.constant 0 : index
    %52 = vector.load %arg5[%c0_17, %c0_18] : memref<1x128xf32, #tpu.memory_space<vmem>>, vector<1x128xf32>
    %53 = vector.broadcast %52 : vector<1x128xf32> to vector<32x128xf32>
    %54 = arith.mulf %51, %53 : vector<32x128xf32>
    %c0_19 = arith.constant 0 : index
    %c0_20 = arith.constant 0 : index
    %55 = vector.load %arg6[%c0_19, %c0_20] : memref<1x128xf32, #tpu.memory_space<vmem>>, vector<1x128xf32>
    %56 = vector.broadcast %55 : vector<1x128xf32> to vector<32x128xf32>
    %57 = arith.addf %54, %56 : vector<32x128xf32>
    %cst_21 = arith.constant 0.000000e+00 : f32
    %58 = vector.shape_cast %24 : vector<32x1xi1> to vector<32x1xi1>
    %59 = vector.broadcast %58 : vector<32x1xi1> to vector<32x128xi1>
    %60 = vector.broadcast %cst_21 : f32 to vector<32x128xf32>
    %61 = arith.select %59, %57, %60 : vector<32x128xi1>, vector<32x128xf32>
    %62 = arith.truncf %61 : vector<32x128xf32> to vector<32x128xbf16>
    %cst_22 = arith.constant 0.000000e+00 : bf16
    %63 = vector.broadcast %cst_22 : bf16 to vector<1x128xbf16>
    %64 = vector.extract_strided_slice %62 {offsets = [0, 0], sizes = [31, 128], strides = [1, 1]} : vector<32x128xbf16> to vector<31x128xbf16>
    %65 = tpu.concatenate %63, %64 in 0 : vector<1x128xbf16>, vector<31x128xbf16> -> vector<32x128xbf16>
    %cst_23 = arith.constant 0.000000e+00 : bf16
    %66 = vector.broadcast %cst_23 : bf16 to vector<1x128xbf16>
    %67 = vector.extract_strided_slice %62 {offsets = [1, 0], sizes = [31, 128], strides = [1, 1]} : vector<32x128xbf16> to vector<31x128xbf16>
    %68 = tpu.concatenate %67, %66 in 0 : vector<31x128xbf16>, vector<1x128xbf16> -> vector<32x128xbf16>
    %c0_24 = arith.constant 0 : index
    %c0_25 = arith.constant 0 : index
    %c0_26 = arith.constant 0 : index
    %69 = vector.load %arg7[%c0_24, %c0_25, %c0_26] : memref<3x128x128xbf16, #tpu.memory_space<vmem>>, vector<1x128x128xbf16>
    %70 = vector.shape_cast %69 : vector<1x128x128xbf16> to vector<128x128xbf16>
    %cst_27 = arith.constant dense<0.000000e+00> : vector<32x128xf32>
    %71 = tpu.matmul %65, %70, %cst_27 {dimension_numbers = #tpu.dot_dimension_numbers<[1], [0], [0], [1], [0, 0, 1, 1], [], []>} : vector<32x128xbf16>, vector<128x128xbf16>, vector<32x128xf32> -> vector<32x128xf32>
    %c1 = arith.constant 1 : index
    %c0_28 = arith.constant 0 : index
    %c0_29 = arith.constant 0 : index
    %72 = vector.load %arg7[%c1, %c0_28, %c0_29] : memref<3x128x128xbf16, #tpu.memory_space<vmem>>, vector<1x128x128xbf16>
    %73 = vector.shape_cast %72 : vector<1x128x128xbf16> to vector<128x128xbf16>
    %cst_30 = arith.constant dense<0.000000e+00> : vector<32x128xf32>
    %74 = tpu.matmul %62, %73, %cst_30 {dimension_numbers = #tpu.dot_dimension_numbers<[1], [0], [0], [1], [0, 0, 1, 1], [], []>} : vector<32x128xbf16>, vector<128x128xbf16>, vector<32x128xf32> -> vector<32x128xf32>
    %75 = arith.addf %71, %74 : vector<32x128xf32>
    %c2 = arith.constant 2 : index
    %c0_31 = arith.constant 0 : index
    %c0_32 = arith.constant 0 : index
    %76 = vector.load %arg7[%c2, %c0_31, %c0_32] : memref<3x128x128xbf16, #tpu.memory_space<vmem>>, vector<1x128x128xbf16>
    %77 = vector.shape_cast %76 : vector<1x128x128xbf16> to vector<128x128xbf16>
    %cst_33 = arith.constant dense<0.000000e+00> : vector<32x128xf32>
    %78 = tpu.matmul %68, %77, %cst_33 {dimension_numbers = #tpu.dot_dimension_numbers<[1], [0], [0], [1], [0, 0, 1, 1], [], []>} : vector<32x128xbf16>, vector<128x128xbf16>, vector<32x128xf32> -> vector<32x128xf32>
    %79 = arith.addf %75, %78 : vector<32x128xf32>
    %c0_34 = arith.constant 0 : index
    %c0_35 = arith.constant 0 : index
    %80 = vector.load %arg8[%c0_34, %c0_35] : memref<1x128xf32, #tpu.memory_space<vmem>>, vector<1x128xf32>
    %81 = vector.broadcast %80 : vector<1x128xf32> to vector<32x128xf32>
    %82 = arith.addf %79, %81 : vector<32x128xf32>
    %cst_36 = arith.constant 5.000000e-01 : f32
    %83 = vector.broadcast %cst_36 : f32 to vector<32x128xf32>
    %84 = arith.mulf %83, %82 : vector<32x128xf32>
    %cst_37 = arith.constant 4.471500e-02 : f32
    %85 = vector.broadcast %cst_37 : f32 to vector<32x128xf32>
    %86 = arith.mulf %85, %82 : vector<32x128xf32>
    %87 = arith.mulf %86, %82 : vector<32x128xf32>
    %88 = arith.mulf %87, %82 : vector<32x128xf32>
    %89 = arith.addf %82, %88 : vector<32x128xf32>
    %cst_38 = arith.constant 0.797884583 : f32
    %90 = vector.broadcast %cst_38 : f32 to vector<32x128xf32>
    %91 = arith.mulf %90, %89 : vector<32x128xf32>
    %92 = math.tanh %91 : vector<32x128xf32>
    %cst_39 = arith.constant 1.000000e+00 : f32
    %93 = vector.broadcast %cst_39 : f32 to vector<32x128xf32>
    %94 = arith.addf %93, %92 : vector<32x128xf32>
    %95 = arith.mulf %84, %94 : vector<32x128xf32>
    %c0_40 = arith.constant 0 : index
    %c0_41 = arith.constant 0 : index
    %c0_42 = arith.constant 0 : index
    %96 = vector.load %arg4[%c0_40, %c0_41, %c0_42] : memref<1x1x128xf32, #tpu.memory_space<vmem>>, vector<1x1x128xf32>
    %97 = vector.shape_cast %96 : vector<1x1x128xf32> to vector<1x128xf32>
    %98 = vector.broadcast %97 : vector<1x128xf32> to vector<32x128xf32>
    %99 = arith.addf %95, %98 : vector<32x128xf32>
    %cst_43 = arith.constant 0.000000e+00 : f32
    %100 = vector.shape_cast %24 : vector<32x1xi1> to vector<32x1xi1>
    %101 = vector.broadcast %100 : vector<32x1xi1> to vector<32x128xi1>
    %102 = vector.broadcast %cst_43 : f32 to vector<32x128xf32>
    %103 = arith.select %101, %99, %102 : vector<32x128xi1>, vector<32x128xf32>
    %104 = arith.truncf %103 : vector<32x128xf32> to vector<32x128xbf16>
    %cst_44 = arith.constant 0.000000e+00 : bf16
    %105 = vector.broadcast %cst_44 : bf16 to vector<1x128xbf16>
    %106 = vector.extract_strided_slice %104 {offsets = [0, 0], sizes = [31, 128], strides = [1, 1]} : vector<32x128xbf16> to vector<31x128xbf16>
    %107 = tpu.concatenate %105, %106 in 0 : vector<1x128xbf16>, vector<31x128xbf16> -> vector<32x128xbf16>
    %cst_45 = arith.constant 0.000000e+00 : bf16
    %108 = vector.broadcast %cst_45 : bf16 to vector<1x128xbf16>
    %109 = vector.extract_strided_slice %104 {offsets = [1, 0], sizes = [31, 128], strides = [1, 1]} : vector<32x128xbf16> to vector<31x128xbf16>
    %110 = tpu.concatenate %109, %108 in 0 : vector<31x128xbf16>, vector<1x128xbf16> -> vector<32x128xbf16>
    %c0_46 = arith.constant 0 : index
    %c0_47 = arith.constant 0 : index
    %c0_48 = arith.constant 0 : index
    %111 = vector.load %arg9[%c0_46, %c0_47, %c0_48] : memref<3x128x256xbf16, #tpu.memory_space<vmem>>, vector<1x128x256xbf16>
    %112 = vector.shape_cast %111 : vector<1x128x256xbf16> to vector<128x256xbf16>
    %cst_49 = arith.constant dense<0.000000e+00> : vector<32x256xf32>
    %113 = tpu.matmul %107, %112, %cst_49 {dimension_numbers = #tpu.dot_dimension_numbers<[1], [0], [0], [1], [0, 0, 1, 1], [], []>} : vector<32x128xbf16>, vector<128x256xbf16>, vector<32x256xf32> -> vector<32x256xf32>
    %c1_50 = arith.constant 1 : index
    %c0_51 = arith.constant 0 : index
    %c0_52 = arith.constant 0 : index
    %114 = vector.load %arg9[%c1_50, %c0_51, %c0_52] : memref<3x128x256xbf16, #tpu.memory_space<vmem>>, vector<1x128x256xbf16>
    %115 = vector.shape_cast %114 : vector<1x128x256xbf16> to vector<128x256xbf16>
    %cst_53 = arith.constant dense<0.000000e+00> : vector<32x256xf32>
    %116 = tpu.matmul %104, %115, %cst_53 {dimension_numbers = #tpu.dot_dimension_numbers<[1], [0], [0], [1], [0, 0, 1, 1], [], []>} : vector<32x128xbf16>, vector<128x256xbf16>, vector<32x256xf32> -> vector<32x256xf32>
    %117 = arith.addf %113, %116 : vector<32x256xf32>
    %c2_54 = arith.constant 2 : index
    %c0_55 = arith.constant 0 : index
    %c0_56 = arith.constant 0 : index
    %118 = vector.load %arg9[%c2_54, %c0_55, %c0_56] : memref<3x128x256xbf16, #tpu.memory_space<vmem>>, vector<1x128x256xbf16>
    %119 = vector.shape_cast %118 : vector<1x128x256xbf16> to vector<128x256xbf16>
    %cst_57 = arith.constant dense<0.000000e+00> : vector<32x256xf32>
    %120 = tpu.matmul %110, %119, %cst_57 {dimension_numbers = #tpu.dot_dimension_numbers<[1], [0], [0], [1], [0, 0, 1, 1], [], []>} : vector<32x128xbf16>, vector<128x256xbf16>, vector<32x256xf32> -> vector<32x256xf32>
    %121 = arith.addf %117, %120 : vector<32x256xf32>
    %c0_58 = arith.constant 0 : index
    %c0_59 = arith.constant 0 : index
    %122 = vector.load %arg10[%c0_58, %c0_59] : memref<1x256xf32, #tpu.memory_space<vmem>>, vector<1x256xf32>
    %123 = vector.broadcast %122 : vector<1x256xf32> to vector<32x256xf32>
    %124 = arith.addf %121, %123 : vector<32x256xf32>
    %125 = vector.extract_strided_slice %124 {offsets = [8, 0], sizes = [16, 256], strides = [1, 1]} : vector<32x256xf32> to vector<16x256xf32>
    %126 = vector.extract_strided_slice %125 {offsets = [0, 0], sizes = [16, 128], strides = [1, 1]} : vector<16x256xf32> to vector<16x128xf32>
    %127 = vector.extract_strided_slice %125 {offsets = [0, 128], sizes = [16, 128], strides = [1, 1]} : vector<16x256xf32> to vector<16x128xf32>
    %c0_60 = arith.constant 0 : index
    %c0_61 = arith.constant 0 : index
    %c0_62 = arith.constant 0 : index
    %128 = vector.load %arg3[%c0_60, %c0_61, %c0_62] : memref<1x16x128xbf16, #tpu.memory_space<vmem>>, vector<1x16x128xbf16>
    %129 = vector.shape_cast %128 : vector<1x16x128xbf16> to vector<16x128xbf16>
    %130 = arith.extf %129 : vector<16x128xbf16> to vector<16x128xf32>
    %131 = arith.mulf %130, %126 : vector<16x128xf32>
    %132 = arith.addf %131, %127 : vector<16x128xf32>
    %c0_63 = arith.constant 0 : index
    %c0_64 = arith.constant 0 : index
    %c0_65 = arith.constant 0 : index
    %133 = vector.load %arg11[%c0_63, %c0_64, %c0_65] : memref<1x16x128xf32, #tpu.memory_space<vmem>>, vector<1x16x128xf32>
    %134 = vector.shape_cast %133 : vector<1x16x128xf32> to vector<16x128xf32>
    %135 = vector.shape_cast %132 : vector<16x128xf32> to vector<1x16x128xf32>
    tpu.vector_store %arg11[%c0_63, %c0_64, %c0_65], %135 {strides = array<i32>} : memref<1x16x128xf32, #tpu.memory_space<vmem>>, vector<1x16x128xf32>,
    return
  }
  func.func @transform_1(%arg0: i32, %arg1: i32) -> (i32, i32, i32) {
    %c0_i32 = arith.constant 0 : i32
    %c0_i32_0 = arith.constant 0 : i32
    return %arg0, %arg1, %c0_i32 : i32, i32, i32
  }
  func.func @transform_2(%arg0: i32, %arg1: i32) -> (i32, i32, i32) {
    %c0_i32 = arith.constant 0 : i32
    %c0_i32_0 = arith.constant 0 : i32
    %c0_i32_1 = arith.constant 0 : i32
    return %arg0, %c0_i32, %c0_i32_0 : i32, i32, i32
  }
  func.func @transform_3(%arg0: i32, %arg1: i32) -> (i32, i32) {
    %c0_i32 = arith.constant 0 : i32
    %c0_i32_0 = arith.constant 0 : i32
    %c0_i32_1 = arith.constant 0 : i32
    return %c0_i32, %c0_i32_0 : i32, i32
  }
  func.func @transform_4(%arg0: i32, %arg1: i32) -> (i32, i32) {
    %c0_i32 = arith.constant 0 : i32
    %c0_i32_0 = arith.constant 0 : i32
    %c0_i32_1 = arith.constant 0 : i32
    return %c0_i32, %c0_i32_0 : i32, i32
  }
  func.func @transform_5(%arg0: i32, %arg1: i32) -> (i32, i32, i32) {
    %c0_i32 = arith.constant 0 : i32
    %c0_i32_0 = arith.constant 0 : i32
    %c0_i32_1 = arith.constant 0 : i32
    %c0_i32_2 = arith.constant 0 : i32
    return %c0_i32, %c0_i32_0, %c0_i32_1 : i32, i32, i32
  }
  func.func @transform_6(%arg0: i32, %arg1: i32) -> (i32, i32) {
    %c0_i32 = arith.constant 0 : i32
    %c0_i32_0 = arith.constant 0 : i32
    %c0_i32_1 = arith.constant 0 : i32
    return %c0_i32, %c0_i32_0 : i32, i32
  }
  func.func @transform_7(%arg0: i32, %arg1: i32) -> (i32, i32, i32) {
    %c0_i32 = arith.constant 0 : i32
    %c0_i32_0 = arith.constant 0 : i32
    %c0_i32_1 = arith.constant 0 : i32
    %c0_i32_2 = arith.constant 0 : i32
    return %c0_i32, %c0_i32_0, %c0_i32_1 : i32, i32, i32
  }
  func.func @transform_8(%arg0: i32, %arg1: i32) -> (i32, i32) {
    %c0_i32 = arith.constant 0 : i32
    %c0_i32_0 = arith.constant 0 : i32
    %c0_i32_1 = arith.constant 0 : i32
    return %c0_i32, %c0_i32_0 : i32, i32
  }
  func.func @transform_9(%arg0: i32, %arg1: i32) -> (i32, i32, i32) {
    %c0_i32 = arith.constant 0 : i32
    %c0_i32_0 = arith.constant 0 : i32
    return %arg0, %arg1, %c0_i32 : i32, i32, i32
  }
}

</mosaic_0001>

<bundles_post_ra>
// kernel: tpu_custom_call.1
= control target key start
LH: loop header
LB: loop body
LE: loop exit
PB: predicated region body
PF: predicated region fallthrough
CT: control target
= control target key end

     0   :  { %s2673_s0 = inlined_call_operand.hbm [shape: bf16[2,32,128], index: 0, kind: input, shape index: {}]   ;;  %s2674_s1 = inlined_call_operand.hbm [shape: bf16[2,16,128], index: 1, kind: input, shape index: {}]   ;;  %s2675_s2 = inlined_call_operand.vmem [shape: f32[2,1,128], index: 2, kind: input, shape index: {}]   ;;  %s2676_s3 = inlined_call_operand.vmem [shape: f32[1,128], index: 3, kind: input, shape index: {}]   ;;  %s2677_s4 = inlined_call_operand.vmem [shape: f32[1,128], index: 4, kind: input, shape index: {}]   ;;  %s2678_s5 = inlined_call_operand.hbm [shape: bf16[3,128,128], index: 5, kind: input, shape index: {}]   ;;  %s2679_s6 = inlined_call_operand.vmem [shape: f32[1,128], index: 6, kind: input, shape index: {}]   ;;  %s2680_s7 = inlined_call_operand.hbm [shape: bf16[3,128,256], index: 7, kind: input, shape index: {}]   ;;  %s2681_s8 = inlined_call_operand.vmem [shape: f32[1,256], index: 8, kind: input, shape index: {}]   ;;  %s2682_s9 = inlined_call_operand.hbm [shape: f32[2,16,128], index: 9, kind: output, shape index: {}]  }
   0x1   :  { %2692 = sst [smem:[#allocation24_spill]] %s2674_s1 }
   0x2   :  { %2693 = sst [smem:[#allocation25_spill]] %s2678_s5 }
   0x3   :  { %2694 = sst [smem:[#allocation26_spill]] %s2680_s7 }
   0x4   :  { %2695 = sst [smem:[#allocation27_spill]] %s2681_s8 }
   0x5   :  { %2696 = sst [smem:[#allocation28_spill]] %s2682_s9 }
   0x6   :  { %14 = vsyncpa [#allocation5], 0 }
   0x7   :  { %16 = vsyncpa [#allocation5 + $0x1], 0 }
   0x8   :  { %17 = vsyncpa [#allocation8], 0 }
   0x9   :  { %18 = vsyncpa [#allocation6], 0 }
   0xa   :  { %20 = vsyncpa [#allocation6 + $0x1], 0  ;;  %s2327_s30 = smov 0   ;;  %s2329_s10 = smov 0  }
   0xb   :  { %s2331_s11 = smov 0   ;;  %s2333_s12 = smov 0  }
   0xc   :  { %s2335_s13 = smov 0   ;;  %s2337_s14 = smov 0  }
   0xd LB: > { %2697 = sst [smem:[#allocation21_spill]] %s2242_s30  ;;  %s1668_s15 = sadd.s32 4294967295, %s2262_s14   ;;  %s2262_s14 = sphi %s2337_s14, %s26_s14   ;;  %s2258_s13 = sphi %s2335_s13, %s2731_s13   ;;  %s2254_s12 = sphi %s2333_s12, %s2730_s12   ;;  %s2250_s11 = sphi %s2331_s11, %s2729_s11   ;;  %s2246_s10 = sphi %s2329_s10, %s2728_s10   ;;  %s2242_s30 = sphi %s2327_s30, %s2727_s30  }
   0xe   : > { %s1669_s16 = sadd.s32 4294967294, %s2262_s14   ;;  %p60_p0 = scmp.ne.s32.totalorder %s2246_s10, %s2242_s30 }
   0xf   : > { %p2361_p1 = scmp.eq.s32.totalorder %s1668_s15, 0  ;;  %p2365_p2 = scmp.eq.s32.totalorder %s1668_s15, 1 }
  0x10   : > { %p244_p3 = scmp.eq.s32.totalorder %s1669_s16, 1  ;;  %p1670_p5 = scmp.ge.s32.totalorder %s2262_s14, 1 }
  0x11   : > { %s2698_s17 = scalar_select %p2361_p1, 1, 0 }
  0x12   : > { %p2371_p4 = por %p2361_p1, %p60_p0  ;;  %p2376_p6 = por %p244_p3, %p60_p0 }
  0x13   : > { %p251_p7 = scmp.lt.s32.totalorder %s2262_s14, 3  ;;  %s2264_s22 = smov [#allocation7]  }
  0x14   : > { %s2700_s19 = scalar_select %p2371_p4, 1, 0 }
  0x15   : > { %s2701_s20 = scalar_select %p2376_p6, 1, 0 }
  0x16   : > { %p2381_p8 = pnand %p1670_p5, %p251_p7  ;;  %s269_s23 = sshll.u32 %s2264_s22, 4  ;;  %s2385_s23 = int_to_ptr.vmem [resolvable:$true] %s269_s23 }
  0x17   : > { %2702 = sst [smem:[#allocation22_spill]] %s2701_s20  ;;  %s2265_s25 = smov [#allocation9]  }
  0x18   : > { %p1880_p9 = pneg %p2381_p8  ;;  %s285_s26 = sshll.u32 %s2265_s25, 4  ;;  %s2396_s26 = int_to_ptr.vmem [resolvable:$true] %s285_s26 }
  0x19   : > { %s2705_s5 = sld [smem:[#allocation25_spill]] }
  0x1a   : > { %p2392_p11 = pnand %p1880_p9, %p2361_p1 }
  0x1c   : > { %p2066_p13 = pneg %p2392_p11 }
  0x1f   : > { %s2064_s29 = scalar_lea.hbm %s2705_s5, 3072 }
  0x20   : > { %p2065_p12 = scmp.ne.s32.totalorder %s2705_s5, %s2064_s29  ;;  %p2071_p5 = scmp.lt.u32.totalorder %s2064_s29, %s2705_s5 }
  0x22   : > { %p2067_p0 = pnand %p2066_p13, %p2065_p12 }
  0x24   : > { %p2068_p3 = pneg %p2067_p0 }
  0x26   : > { %p2073_p7 = pnand %p2071_p5, %p2068_p3 }
  0x28   : > { %2076 = shalt.err (!%p2073_p7)
}
  0x29   : > { %s2077_s25 = scalar_lea.vmem %s2385_s23, 3072  ;;  %p2085_p1 = scmp.lt.s32.totalorder %s2385_s23, %s2385_s23 }
  0x2a   : > { %p2078_p9 = scmp.ne.s32.totalorder %s2385_s23, %s2077_s25  ;;  %p2086_p12 = scmp.lt.s32.totalorder %s2077_s25, %s2077_s25 }
  0x2c   : > { %p2080_p10 = pnand %p2078_p9, %p2066_p13  ;;  %p2087_p0 = por %p2086_p12, %p2085_p1 }
  0x2e   : > { %p2081_p6 = pneg %p2080_p10 }
  0x30   : > { %p2088_p4 = pnand %p2087_p0, %p2081_p6 }
  0x32   : > { %2091 = shalt.err (!%p2088_p4)
}
  0x33   : > { %s2689_s20 = smov 64   ;;  %s2267_s27 = smov 4  }
  0x34   : > { %1883 = dma.hbm_to_vmem [thread:$0]  (!%p2392_p11), %s2705_s5, 3072, %s2385_s23, [#allocation8], %s2689_s20, %s2689_s20, %s2267_s27  }
  0x35   : > { %s2706_s7 = sld [smem:[#allocation26_spill]] }
  0x3b   : > { %s2092_s22 = scalar_lea.hbm %s2706_s7, 6144 }
  0x3c   : > { %p2093_p1 = scmp.ne.s32.totalorder %s2706_s7, %s2092_s22  ;;  %p2099_p10 = scmp.lt.u32.totalorder %s2092_s22, %s2706_s7 }
  0x3e   : > { %p2095_p4 = pnand %p2093_p1, %p2066_p13 }
  0x40   : > { %p2096_p6 = pneg %p2095_p4 }
  0x42   : > { %p2101_p3 = pnand %p2099_p10, %p2096_p6 }
  0x44   : > { %2104 = shalt.err (!%p2101_p3)
}
  0x45   : > { %s2105_s23 = scalar_lea.vmem %s2396_s26, 6144  ;;  %p2113_p12 = scmp.lt.s32.totalorder %s2396_s26, %s2396_s26 }
  0x46   : > { %p2106_p5 = scmp.ne.s32.totalorder %s2396_s26, %s2105_s23  ;;  %p2114_p0 = scmp.lt.s32.totalorder %s2105_s23, %s2105_s23 }
  0x48   : > { %p2108_p7 = pnand %p2106_p5, %p2066_p13  ;;  %p2115_p1 = por %p2114_p0, %p2113_p12 }
  0x4a   : > { %p2109_p9 = pneg %p2108_p7 }
  0x4c   : > { %p2116_p4 = pnand %p2115_p1, %p2109_p9 }
  0x4e   : > { %2119 = shalt.err (!%p2116_p4)
}
  0x4f   : > { %s2268_s8 = smov 128   ;;  %s2269_s9 = smov 8  }
  0x50   : > { %1886 = dma.hbm_to_vmem [thread:$0]  (!%p2392_p11), %s2706_s7, 6144, %s2396_s26, [#allocation8], %s2268_s8, %s2268_s8, %s2269_s9  }
  0x51   : > { %s38_s29 = sadd.s32 1, %s2258_s13  ;;  %s47_s15 = sadd.s32 1, %s2250_s11 }
  0x52   : > { %p40_p13 = scmp.ge.s32.totalorder %s38_s29, 2  ;;  %p54_p6 = scmp.ne.s32.totalorder %s2250_s11, %s2246_s10 }
  0x53   : > { %p55_p10 = scmp.eq.s32.totalorder %s2262_s14, 0  ;;  %p1897_p3 = scmp.lt.s32.totalorder %s2262_s14, 2 }
  0x54   : > { %s2733_s29 = smov (%p40_p13, %s38_s29), 0  ;;  %p2463_p7 = por %p2365_p2, %p54_p6 }
  0x55   : > { %2707 = sst [smem:[#allocation23_spill]] %s2733_s29  ;;  %p56_p5 = por %p55_p10, %p54_p6 }
  0x56   : > { %s2708_s16 = scalar_select %p2463_p7, 1, 0 }
  0x57   : > { %s42_s24 = ssub.s32 %s2258_s13, %s2733_s29  ;;  %s302_s22 = sand.u32 1, %s2250_s11  }
  0x58   : > { %p45_p9 = scmp.eq.s32.totalorder %s42_s24, 0  ;;  %s1674_s26 = sshll.u32 %s302_s22, 3 }
  0x59   : > { %s1769_s25 = sshll.u32 %s2258_s13, 7  ;;  %s2709_s1 = sld [smem:[#allocation24_spill]] }
  0x5a   : > { %s2472_s23 = scalar_select %p45_p9, %s2250_s11, %s47_s15  }
  0x5b   : > { %s306_s18 = scalar_lea.vmem [#allocation4], %s1674_s26  ;;  %p2481_p2 = pnand %p1897_p3, %p56_p5 }
  0x5c   : > { %s315_s28 = sshll.u32 %s306_s18, 4  ;;  %s2487_s15 = scalar_lea.sflag [#allocation5], %s302_s22  ;;  %s2485_s28 = int_to_ptr.vmem [resolvable:$true] %s315_s28 }
  0x5d   : > { %p2122_p12 = pneg %p2481_p2 }
  0x5f   : > { %s2477_s30 = scalar_lea.hbm %s2709_s1, %s1769_s25  ;;  %s2125_s8 = scalar_lea.hbm %s2709_s1, 256 }
  0x60   : > { %s2120_s24 = scalar_lea.hbm %s2477_s30, 128  ;;  %p2126_p4 = scmp.lt.u32.totalorder %s2477_s30, %s2709_s1 }
  0x61   : > { %p2121_p11 = scmp.ne.s32.totalorder %s2477_s30, %s2120_s24  ;;  %p2127_p13 = scmp.lt.u32.totalorder %s2125_s8, %s2120_s24 }
  0x62   : > { %p2129_p10 = scmp.lt.u32.totalorder %s2120_s24, %s2477_s30 }
  0x63   : > { %p2123_p0 = pnand %p2122_p12, %p2121_p11  ;;  %p2128_p6 = por %p2127_p13, %p2126_p4 }
  0x65   : > { %p2124_p1 = pneg %p2123_p0  ;;  %p2130_p3 = por %p2129_p10, %p2128_p6 }
  0x67   : > { %p2131_p5 = pnand %p2130_p3, %p2124_p1 }
  0x69   : > { %2134 = shalt.err (!%p2131_p5)
}
  0x6a   : > { %s2135_s22 = scalar_lea.vmem %s2485_s28, 128  ;;  %s2270_s26 = smov [#allocation4]  }
  0x6b   : > { %p2136_p9 = scmp.ne.s32.totalorder %s2485_s28, %s2135_s22  ;;  %s2140_s25 = sshll.u32 %s2270_s26, 4  ;;  %s2141_s25 = int_to_ptr.vmem [resolvable:$false] %s2140_s25 }
  0x6c   : > { %s2142_s9 = scalar_lea.vmem %s2141_s25, 256  ;;  %p2143_p7 = scmp.lt.s32.totalorder %s2485_s28, %s2141_s25 }
  0x6d   : > { %p2138_p11 = pnand %p2136_p9, %p2122_p12  ;;  %p2144_p4 = scmp.lt.s32.totalorder %s2142_s9, %s2135_s22 }
  0x6f   : > { %p2139_p0 = pneg %p2138_p11  ;;  %p2145_p13 = por %p2144_p4, %p2143_p7 }
  0x71   : > { %p2146_p6 = pnand %p2145_p13, %p2139_p0 }
  0x73   : > { %2149 = shalt.err (!%p2146_p6)
}
  0x74   : > { %s2711_s24 = smov 64   ;;  %333 = sbr.rel (%p2381_p8) target bundleno = 1033 (0x409), region = 52 }
  0x75   : > { %1890 = dma.hbm_to_vmem [thread:$0]  (!%p2481_p2), %s2477_s30, 128, %s2485_s28, %s2487_s15, %s2711_s24, %s2711_s24, %s2267_s27  }
  0x76   : > { %s2521_s8 = sand.u32 (!%p2381_p8), 1, %s2246_s10   ;;  %p2712_p7 = scmp.ne.s32.totalorder (!%p2381_p8), %s2700_s19, 0 }
  0x77   : > { %s1678_s18 = sshll.u32 (!%p2381_p8), %s2521_s8, 3  ;;  %s336_s22 = scalar_lea.sflag (!%p2381_p8), [#allocation5], %s2521_s8 }
  0x78   : > { %s2525_s26 = scalar_lea.vmem (!%p2381_p8), [#allocation4], %s1678_s18 }
  0x7b   : > { %2227 = dma.done.wait (%p2712_p7), %s336_s22, 128  }
  0x7c   : > { %2229 = vsyncadd (%p2712_p7), %s336_s22, 4294967168  ;;  %p2713_p2 = scmp.ne.s32.totalorder %s2698_s17, 0 }
  0x7e   : > { %2231 = dma.done.wait (%p2713_p2), [#allocation8], 9216  }
  0x7f   : > { %2233 = vsyncadd (%p2713_p2), [#allocation8], 4294958080  ;;  %s1681_s21 = sshll.u32 %s2521_s8, 4  ;;  %p384_p8 = scmp.lt.s32.totalorder %s2254_s12, 1 }
  0x80   : > { %s1770_s20 = sshll.u32 %s2254_s12, 8  ;;  %s2271_s9 = smov [#allocation2]  }
  0x81   : > { %s2539_s27 = scalar_select %p384_p8, %s2254_s12, 1 }
  0x82   : > { %s400_s28 = scalar_lea.hbm %s2673_s0, %s1770_s20  ;;  %s412_s24 = sshll.u32 %s2271_s9, 4  ;;  %s413_s24 = int_to_ptr.vmem [resolvable:$true] %s412_s24 }
  0x83   : > { %s386_s17 = scalar_lea.vmem %s2675_s2, %s2539_s27  ;;  %s2150_s18 = scalar_lea.hbm %s400_s28, 256 }
  0x84   : > { %p2151_p12 = scmp.ne.s32.totalorder %s400_s28, %s2150_s18  ;;  %s2152_s5 = scalar_lea.hbm %s2673_s0, 512 }
  0x85   : > { %p2153_p1 = scmp.lt.u32.totalorder %s400_s28, %s2673_s0  ;;  %p2154_p10 = scmp.lt.u32.totalorder %s2152_s5, %s2150_s18 }
  0x86   : > { %p2156_p5 = scmp.lt.u32.totalorder %s2150_s18, %s400_s28 }
  0x87   : > { %p2155_p3 = por %p2154_p10, %p2153_p1 }
  0x89   : > { %p2157_p9 = por %p2156_p5, %p2155_p3 }
  0x8b   : > { %p2158_p11 = pnand %p2157_p9, %p2151_p12 }
  0x8d   : > { %2161 = shalt.err (!%p2158_p11)  }
  0x8e   : > { %s2162_s30 = scalar_lea.vmem %s413_s24, 256  ;;  %s2166_s19 = scalar_lea.vmem %s413_s24, 512 }
  0x8f   : > { %p2163_p0 = scmp.ne.s32.totalorder %s413_s24, %s2162_s30  ;;  %p2167_p4 = scmp.lt.s32.totalorder %s413_s24, %s413_s24 }
  0x90   : > { %p2168_p13 = scmp.lt.s32.totalorder %s2166_s19, %s2162_s30 }
  0x92   : > { %p2169_p6 = por %p2168_p13, %p2167_p4 }
  0x94   : > { %p2170_p7 = pnand %p2169_p6, %p2163_p0 }
  0x96   : > { %2173 = shalt.err (!%p2170_p7)  }
  0x97   : > { %415 = dma.hbm_to_vmem [thread:$0]  %s400_s28, 256, %s413_s24, [#allocation3] }
  0x98   : > { %s2556_s1 = scalar_lea.vmem [#allocation10], %s1681_s21 }
  0x99   : > { %2234 = dma.done.wait [#allocation3], 256 }
  0x9a   : > { %2235 = vsyncadd [#allocation3], 4294967040  ;;  %v482_v0 = vlaneseq  ;;  %v476_v2 = vld [vmem:[#allocation2] sm:$0xff]  ;;  %v477_v3 = vld [vmem:[#allocation2 + $0x8] sm:$0xf]  ;;  %v2272_v49 = vmov 0.0  }
  0x9b   : > { %v479_v4 = vunpack.c.h.bf16 %v476_v2  ;;  %v480_v5 = vunpack.c.l.bf16 %v477_v3  ;;  %v1960_v8 = vld [vmem:[#allocation7 + $0x40] sm:$0xff]   ;;  %v1961_v9 = vld [vmem:[#allocation7 + $0x48] sm:$0xff]   ;;  %v1962_v20 = vld [vmem:[#allocation7 + $0x50] sm:$0xff]   ;;  %vm573_vm1 = vsmask.f32 256  ;;  %vm591_vm2 = vcmask 1040384  }
  0x9c   : > { %v483_v1 = vand.u32 127, %v482_v0  ;;  %1808 = vmatprep.subr.bf16.mxu0 %v1960_v8  ;;  %v1963_v21 = vld [vmem:[#allocation7] sm:$0xff]   ;;  %v1964_v22 = vld [vmem:[#allocation7 + $0x58] sm:$0xff]   ;;  %v1965_v23 = vld [vmem:[#allocation7 + $0x8] sm:$0xff]   ;;  %vm594_vm4 = vsmask.f32 7424 }
  0x9d   : > { %1809 = vmatpush3.bf16.msra.mxu0 %v1960_v8  ;;  %1828 = vmatprep.subr.bf16.mxu1 %v1963_v21  ;;  %v1966_v24 = vld [vmem:[#allocation7 + $0x60] sm:$0xff]   ;;  %v1967_v25 = vld [vmem:[#allocation7 + $0x10] sm:$0xff]   ;;  %v1968_v26 = vld [vmem:[#allocation7 + $0x68] sm:$0xff]   ;;  %vm602_vm5 = vcmask 1047552   ;;  %s2718_s24 = sld [smem:[#allocation27_spill]]  ;;  %s2719_s30 = sld [smem:[#allocation28_spill]] }
  0x9e   : > { %vm484_vm0 = vcmp.lt.s32.totalorder %v483_v1, 4  ;;  %1810 = vmatprep.subr.bf16.mxu0 %v1961_v9  ;;  %1829 = vmatpush3.bf16.msra.mxu1 %v1963_v21  ;;  %v1969_v27 = vld [vmem:[#allocation7 + $0x18] sm:$0xff]   ;;  %v1970_v28 = vld [vmem:[#allocation7 + $0x70] sm:$0xff]   ;;  %v1971_v29 = vld [vmem:[#allocation7 + $0x20] sm:$0xff]   ;;  %s1508_s7 = scalar_lea.sflag [#allocation6], %s2521_s8  ;;  %p2721_p8 = scmp.ne.s32.totalorder %s2708_s16, 0 }
  0x9f   : > { %v486_v6 = vsel %vm484_vm0, %v479_v4, 0.0  ;;  %v487_v7 = vsel %vm484_vm0, %v480_v5, 0.0  ;;  %1830 = vmatprep.subr.bf16.mxu1 %v1965_v23  ;;  %v1972_v30 = vld [vmem:[#allocation7 + $0x78] sm:$0xff]   ;;  %v1973_v31 = vld [vmem:[#allocation7 + $0x28] sm:$0xff]   ;;  %v1974_v32 = vld [vmem:[#allocation7 + $0x30] sm:$0xff]   ;;  %s2274_s21 = smov [#allocation10]  }
  0xa0   : > { %491 = vadd.xlane.f32.xlu0 %v486_v6  ;;  %v1975_v33 = vld [vmem:[#allocation7 + $0x80] sm:$0xff]   ;;  %v1976_v34 = vld [vmem:[#allocation7 + $0x38] sm:$0xff]   ;;  %v1686_v42 = vld [vmem:[%s2676_s3] ss:$0 sm:$0xff]  ;;  %s2178_s12 = sshll.u32 %s2274_s21, 4  ;;  %s2179_s12 = int_to_ptr.vmem [resolvable:$false] %s2178_s12 }
  0xa1   : > { %1811 = vmatpush3.bf16.msra.mxu0 %v1961_v9  ;;  %v1687_v44 = vld [vmem:[%s2677_s4] ss:$0 sm:$0xff]  ;;  %v1977_v58 = vld [vmem:[#allocation7 + $0x88] sm:$0xff]   ;;  %vm2572_vm3 = vmand %vm591_vm2, %vm573_vm1  ;;  %s2180_s28 = scalar_lea.vmem %s2179_s12, 512 }
  0xa2   : > { %1812 = vmatprep.subr.bf16.mxu0 %v1962_v20  ;;  %1831 = vmatpush3.bf16.msra.mxu1 %v1965_v23  ;;  %v1979_v8 = vld [vmem:[#allocation7 + $0x98] sm:$0xff]   ;;  %v1980_v9 = vld [vmem:[#allocation7 + $0xa0] sm:$0xff]   ;;  %vm2581_vm6 = vmand %vm602_vm5, %vm594_vm4 }
  0xa3   : > { %1832 = vmatprep.subr.bf16.mxu1 %v1967_v25  ;;  %v1995_v21 = vld [vmem:[#allocation9 + $0x4] ss:$8 sps:$4 sm:$0xff]   ;;  %v1993_v23 = vld [vmem:[#allocation9] ss:$8 sps:$4 sm:$0xff]   ;;  %v2047_v59 = vld [vmem:[#allocation9 + $0x150] ss:$8 sps:$4 sm:$0xff]   ;;  %s2720_s19 = smov %s2719_s30  ;;  %s2621_s5 = scalar_lea.hbm %s2719_s30, %s1770_s20 }
  0xa4   : > { %493 = vadd.xlane.f32.xlu0 %v487_v7 }
  0xa5   : > { %1813 = vmatpush3.bf16.msra.mxu0 %v1962_v20  ;;  %v1992_v20 = vld [vmem:[#allocation9 + $0xa4] ss:$8 sps:$4 sm:$0xff]  }
  0xa6   : > { %1814 = vmatprep.subr.bf16.mxu0 %v1964_v22  ;;  %1833 = vmatpush3.bf16.msra.mxu1 %v1967_v25  ;;  %v2001_v25 = vld [vmem:[#allocation9 + $0x14] ss:$8 sps:$4 sm:$0xff]  }
  0xa7   : > { %1834 = vmatprep.subr.bf16.mxu1 %v1969_v27 }
  0xa9   : > { %1815 = vmatpush3.bf16.msra.mxu0 %v1964_v22  ;;  %v1990_v22 = vld [vmem:[#allocation9 + $0xa0] ss:$8 sps:$4 sm:$0xff]  }
  0xaa   : > { %1816 = vmatprep.subr.bf16.mxu0 %v1966_v24  ;;  %1835 = vmatpush3.bf16.msra.mxu1 %v1969_v27  ;;  %v1999_v27 = vld [vmem:[#allocation9 + $0x10] ss:$8 sps:$4 sm:$0xff]  }
  0xab   : > { %1836 = vmatprep.subr.bf16.mxu1 %v1971_v29 }
  0xad   : > { %1817 = vmatpush3.bf16.msra.mxu0 %v1966_v24  ;;  %v1998_v24 = vld [vmem:[#allocation9 + $0xb4] ss:$8 sps:$4 sm:$0xff]  }
  0xae   : > { %1818 = vmatprep.subr.bf16.mxu0 %v1968_v26  ;;  %1837 = vmatpush3.bf16.msra.mxu1 %v1971_v29  ;;  %v2004_v29 = vld [vmem:[#allocation9 + $0xc4] ss:$8 sps:$4 sm:$0xff]  }
  0xaf   : > { %1838 = vmatprep.subr.bf16.mxu1 %v1973_v31 }
  0xb1   : > { %1819 = vmatpush3.bf16.msra.mxu0 %v1968_v26  ;;  %v1996_v26 = vld [vmem:[#allocation9 + $0xb0] ss:$8 sps:$4 sm:$0xff]  }
  0xb2   : > { %1820 = vmatprep.subr.bf16.mxu0 %v1970_v28  ;;  %1839 = vmatpush3.bf16.msra.mxu1 %v1973_v31  ;;  %v2007_v31 = vld [vmem:[#allocation9 + $0x24] ss:$8 sps:$4 sm:$0xff]  }
  0xb3   : > { %1840 = vmatprep.subr.bf16.mxu1 %v1974_v32 }
  0xb5   : > { %1821 = vmatpush3.bf16.msra.mxu0 %v1970_v28  ;;  %v2002_v28 = vld [vmem:[#allocation9 + $0xc0] ss:$8 sps:$4 sm:$0xff]  }
  0xb6   : > { %1822 = vmatprep.subr.bf16.mxu0 %v1972_v30  ;;  %1841 = vmatpush3.bf16.msra.mxu1 %v1974_v32  ;;  %v2010_v32 = vld [vmem:[#allocation9 + $0xd4] ss:$8 sps:$4 sm:$0xff]  }
  0xb7   : > { %1842 = vmatprep.subr.bf16.mxu1 %v1976_v34 }
  0xb9   : > { %1823 = vmatpush3.bf16.msra.mxu0 %v1972_v30  ;;  %v2005_v30 = vld [vmem:[#allocation9 + $0x20] ss:$8 sps:$4 sm:$0xff]  }
  0xba   : > { %1848 = vmatprep.subr.bf16.mxu0 %v1975_v33  ;;  %1843 = vmatpush3.bf16.msra.mxu1 %v1976_v34  ;;  %v2008_v34 = vld [vmem:[#allocation9 + $0xd0] ss:$8 sps:$4 sm:$0xff]  }
 0x12d   : > { %v492_v10 = vpop.xlane.xlu0 %491 }
 0x12e   : > { %v498_v11 = vmul.f32 0.25, %v492_v10  ;;  %v1981_v10 = vld [vmem:[#allocation7 + $0xa8] sm:$0xff]  }
 0x130   : > { %v502_v12 = vsub.f32 %v479_v4, %v498_v11  ;;  %v1978_v4 = vld [vmem:[#allocation7 + $0x90] sm:$0xff]  }
 0x131   : > { %v494_v13 = vpop.xlane.xlu0 %493  ;;  %v1982_v11 = vld [vmem:[#allocation7 + $0xb0] sm:$0xff]  }
 0x132   : > { %v499_v14 = vmul.f32 0.25, %v494_v13  ;;  %v506_v15 = vsel %vm484_vm0, %v502_v12, 0.0  ;;  %v1983_v12 = vld [vmem:[#allocation7 + $0xb8] sm:$0xff]  }
 0x133   : > { %v510_v16 = vmul.f32 %v506_v15, %v506_v15 }
 0x134   : > { %v503_v17 = vsub.f32 %v480_v5, %v499_v14 }
 0x135   : > { %515 = vadd.xlane.f32.xlu1 %v510_v16  ;;  %v1986_v16 = vld [vmem:[#allocation9 + $0x84] ss:$8 sps:$4 sm:$0xff]  }
 0x136   : > { %v507_v18 = vsel %vm484_vm0, %v503_v17, 0.0  ;;  %v1984_v17 = vld [vmem:[#allocation9 + $0x80] ss:$8 sps:$4 sm:$0xff]   ;;  %1153 = vmatprep.subr.bf16.mxu1 %v1986_v16 }
 0x137   : > { %v511_v19 = vmul.f32 %v507_v18, %v507_v18 }
 0x139   : > { %517 = vadd.xlane.f32.xlu1 %v511_v19  ;;  %v1987_v19 = vld [vmem:[#allocation9 + $0x90] ss:$8 sps:$4 sm:$0xff]  }
 0x1c2   : > { %v516_v35 = vpop.xlane.xlu1 %515 }
 0x1c3   : > { %v522_v36 = vmul.f32 0.25, %v516_v35  ;;  %v2011_v35 = vld [vmem:[#allocation9 + $0x30] ss:$8 sps:$4 sm:$0xff]  }
 0x1c5   : > { %v526_v37 = vadd.f32 1e-05, %v522_v36  ;;  %v2016_v36 = vld [vmem:[#allocation9 + $0xe4] ss:$8 sps:$4 sm:$0xff]  }
 0x1c6   : > { %v518_v38 = vpop.xlane.xlu1 %517 }
 0x1c7   : > { %2056 = vrsqrt.f32 %v526_v37  ;;  %v523_v39 = vmul.f32 0.25, %v518_v38  ;;  %v2019_v37 = vld [vmem:[#allocation9 + $0x44] ss:$8 sps:$4 sm:$0xff]   ;;  %v2273_v38 = vmov 0  }
 0x1c9   : > { %v527_v40 = vadd.f32 1e-05, %v523_v39  ;;  %v2014_v39 = vld [vmem:[#allocation9 + $0xe0] ss:$8 sps:$4 sm:$0xff]  }
 0x1cb   : > { %2058 = vrsqrt.f32 %v527_v40  ;;  %v2017_v40 = vld [vmem:[#allocation9 + $0x40] ss:$8 sps:$4 sm:$0xff]  }
 0x1d1   : > { %v2057_v41 = vpop.eup %2056 }
 0x1d2   : > { %v534_v43 = vmul.f32 %v2057_v41, %v506_v15  ;;  %v2022_v41 = vld [vmem:[#allocation9 + $0xf4] ss:$8 sps:$4 sm:$0xff]  }
 0x1d4   : > { %v545_v45 = vmul.f32 %v1686_v42, %v534_v43  ;;  %v2020_v43 = vld [vmem:[#allocation9 + $0xf0] ss:$8 sps:$4 sm:$0xff]  }
 0x1d5   : > { %v2059_v46 = vpop.eup %2058 }
 0x1d6   : > { %v556_v47 = vadd.f32 %v1687_v44, %v545_v45  ;;  %v535_v48 = vmul.f32 %v2059_v46, %v507_v18  ;;  %v1989_v18 = vld [vmem:[#allocation9 + $0x94] ss:$8 sps:$4 sm:$0xff]   ;;  %v2031_v45 = vld [vmem:[#allocation9 + $0x104] ss:$8 sps:$4 sm:$0xff]  }
 0x1d7   : > { %v2028_v46 = vld [vmem:[#allocation9 + $0x64] ss:$8 sps:$4 sm:$0xff]  }
 0x1d8   : > { %v571_v50 = vpack.c.bf16 %v556_v47, %v2272_v49  ;;  %v546_v51 = vmul.f32 %v1686_v42, %v535_v48  ;;  %v2025_v42 = vld [vmem:[#allocation9 + $0x54] ss:$8 sps:$4 sm:$0xff]   ;;  %v2026_v47 = vld [vmem:[#allocation9 + $0x60] ss:$8 sps:$4 sm:$0xff]   ;;  %v2032_v48 = vld [vmem:[#allocation9 + $0x70] ss:$8 sps:$4 sm:$0xff]  }
 0x1da   : > { %1824 = vmatprep.mubr.bf16.mxu0 %v571_v50  ;;  %v557_v52 = vadd.f32 %v1687_v44, %v546_v51  ;;  %v575_v53 = vshrl.u32 %v571_v50, 16  ;;  %v578_v54 = vshll.u32 %v571_v50, 16  ;;  %v2023_v44 = vld [vmem:[#allocation9 + $0x50] ss:$8 sps:$4 sm:$0xff]   ;;  %v2034_v50 = vld [vmem:[#allocation9 + $0x74] ss:$8 sps:$4 sm:$0xff]  }
 0x1dc   : > { %v572_v55 = vpack.c.bf16 %v2272_v49, %v557_v52  ;;  %v577_v56 = vrot.slane %v575_v53, 7  ;;  %v595_v57 = vrot.slane %v578_v54, 1 }
 0x1de   : > { %v582_v60 = vshrl.u32 %v572_v55, 16  ;;  %1825 = vmatmul.mubr.bf16.vlgmr.msra.gmra.mrb[0].mxu0 %v572_v55  ;;  %v580_v61 = vor.u32 %v578_v54, %v577_v56  ;;  %v585_v62 = vshll.u32 %v572_v55, 16  ;;  %v596_v1 = vor.u32 %v595_v57, %v575_v53 }
 0x1df   : > { %1849 = vmatpush3.bf16.msra.mxu0 %v1975_v33  ;;  %v2013_v33 = vld [vmem:[#allocation9 + $0x34] ss:$8 sps:$4 sm:$0xff]  }
 0x1e0   : > { %v593_v63 = vsel %vm2572_vm3, 0, %v580_v61  ;;  %1850 = vmatprep.subr.bf16.mxu0 %v1977_v58  ;;  %v597_v2 = vrot.slane %v585_v62, 1  ;;  %v584_v3 = vrot.slane %v582_v60, 7 }
 0x1e1   : > { %1844 = vmatprep.mubr.bf16.mxu1 %v593_v63  ;;  %v1712_v63 = vld [vmem:[%s2679_s6] ss:$0 sm:$0xff] }
 0x1e2   : > { %v598_v5 = vsel %vm594_vm4, %v596_v1, %v597_v2  ;;  %v587_v6 = vor.u32 %v585_v62, %v584_v3  ;;  %v599_v13 = vor.u32 %v597_v2, %v582_v60 }
 0x1e3   : > { %1851 = vmatpush3.bf16.msra.mxu0 %v1977_v58  ;;  %1864 = vmatprep.mubr.bf16.mxu0 %v598_v5 }
 0x1e4   : > { %v588_v7 = vsel %vm573_vm1, %v577_v56, %v587_v6  ;;  %1852 = vmatprep.subr.bf16.mxu0 %v1978_v4  ;;  %v604_v15 = vsel %vm2581_vm6, %v599_v13, 0 }
 0x1e5   : > { %1845 = vmatmul.mubr.bf16.vlgmr.msra.gmra.mrb[0].mxu1 %v588_v7 }
 0x1e6   : > { %1154 = vmatpush1.bf16.msra.mxu1 %v1984_v17  ;;  %1185 = vmatprep.mubr.bf16.mxu1 %v2273_v38 }
 0x1e7   : > { %1853 = vmatpush3.bf16.msra.mxu0 %v1978_v4  ;;  %1155 = vmatprep.subr.bf16.mxu1 %v1989_v18 }
 0x1e8   : > { %1854 = vmatprep.subr.bf16.mxu0 %v1979_v8 }
 0x1ea   : > { %1156 = vmatpush1.bf16.msra.mxu1 %v1987_v19 }
 0x1eb   : > { %1855 = vmatpush3.bf16.msra.mxu0 %v1979_v8  ;;  %1157 = vmatprep.subr.bf16.mxu1 %v1992_v20 }
 0x1ec   : > { %1856 = vmatprep.subr.bf16.mxu0 %v1980_v9 }
 0x1ee   : > { %1158 = vmatpush1.bf16.msra.mxu1 %v1990_v22  ;;  %v1713_v22 = vld [vmem:[%s386_s17] ss:$0 sm:$0xff] }
 0x1ef   : > { %1857 = vmatpush3.bf16.msra.mxu0 %v1980_v9  ;;  %1159 = vmatprep.subr.bf16.mxu1 %v1998_v24 }
 0x1f0   : > { %1858 = vmatprep.subr.bf16.mxu0 %v1981_v10 }
 0x1f2   : > { %1160 = vmatpush1.bf16.msra.mxu1 %v1996_v26 }
 0x1f3   : > { %1859 = vmatpush3.bf16.msra.mxu0 %v1981_v10  ;;  %1161 = vmatprep.subr.bf16.mxu1 %v2004_v29 }
 0x1f4   : > { %1860 = vmatprep.subr.bf16.mxu0 %v1982_v11 }
 0x1f6   : > { %1162 = vmatpush1.bf16.msra.mxu1 %v2002_v28 }
 0x1f7   : > { %1861 = vmatpush3.bf16.msra.mxu0 %v1982_v11  ;;  %1163 = vmatprep.subr.bf16.mxu1 %v2010_v32 }
 0x1f8   : > { %1862 = vmatprep.subr.bf16.mxu0 %v1983_v12 }
 0x1fa   : > { %1164 = vmatpush1.bf16.msra.mxu1 %v2008_v34  ;;  %v2037_v34 = vld [vmem:[#allocation9 + $0x114] ss:$8 sps:$4 sm:$0xff]  }
 0x1fb   : > { %1863 = vmatpush3.bf16.msra.mxu0 %v1983_v12  ;;  %1165 = vmatprep.subr.bf16.mxu1 %v2016_v36 }
 0x1fc   : > { %1282 = vmatprep.subr.bf16.mxu0 %v1995_v21 }
 0x1fe   : > { %1865 = vmatmul.mubr.bf16.vlgmr.msra.gmra.mrb[4].mxu0 %v604_v15  ;;  %1166 = vmatpush1.bf16.msra.mxu1 %v2014_v39 }
 0x1ff   : > { %1283 = vmatpush1.bf16.msra.mxu0 %v1993_v23  ;;  %1314 = vmatprep.mubr.bf16.mxu0 %v2273_v38 }
 0x200   : > { %1284 = vmatprep.subr.bf16.mxu0 %v2001_v25  ;;  %1167 = vmatprep.subr.bf16.mxu1 %v2022_v41 }
 0x202   : > { %1168 = vmatpush1.bf16.msra.mxu1 %v2020_v43 }
 0x203   : > { %1285 = vmatpush1.bf16.msra.mxu0 %v1999_v27  ;;  %1428 = vmatprep.subr.bf16.mxu1 %v2031_v45 }
 0x204   : > { %1286 = vmatprep.subr.bf16.mxu0 %v2007_v31  ;;  %v2029_v31 = vld [vmem:[#allocation9 + $0x100] ss:$8 sps:$4 sm:$0xff]  }
 0x207   : > { %1287 = vmatpush1.bf16.msra.mxu0 %v2005_v30 }
 0x208   : > { %1288 = vmatprep.subr.bf16.mxu0 %v2013_v33 }
 0x20b   : > { %1289 = vmatpush1.bf16.msra.mxu0 %v2011_v35 }
 0x20c   : > { %1290 = vmatprep.subr.bf16.mxu0 %v2019_v37 }
 0x20f   : > { %1291 = vmatpush1.bf16.msra.mxu0 %v2017_v40  ;;  %v2035_v40 = vld [vmem:[#allocation9 + $0x110] ss:$8 sps:$4 sm:$0xff]  }
 0x210   : > { %1292 = vmatprep.subr.bf16.mxu0 %v2025_v42 }
 0x213   : > { %1293 = vmatpush1.bf16.msra.mxu0 %v2023_v44  ;;  %v2040_v44 = vld [vmem:[#allocation9 + $0x124] ss:$8 sps:$4 sm:$0xff]  }
 0x214   : > { %1294 = vmatprep.subr.bf16.mxu0 %v2028_v46 }
 0x217   : > { %1295 = vmatpush1.bf16.msra.mxu0 %v2026_v47 }
 0x218   : > { %1296 = vmatprep.subr.bf16.mxu0 %v2034_v50 }
 0x21b   : > { %1297 = vmatpush1.bf16.msra.mxu0 %v2032_v48  ;;  %v2038_v48 = vld [vmem:[#allocation9 + $0x120] ss:$8 sps:$4 sm:$0xff]  }
 0x2b1   : > { %v1826_v51 = vpop.f32.mrb[0].mxu0 }
 0x2b2   : > { %v720_v52 = vpop.f32.mrb[1].mxu0 }
 0x2b3   : > { %v1827_v53 = vpop.f32.mrb[2].mxu0 }
 0x2b4   : > { %v723_v54 = vpop.f32.mrb[3].mxu0  ;;  %v2041_v53 = vld [vmem:[#allocation9 + $0x130] ss:$8 sps:$4 sm:$0xff]  }
 0x2b8   : > { %v1846_v55 = vpop.f32.mrb[0].mxu1 }
 0x2b9   : > { %v826_v56 = vadd.f32 %v1846_v55, %v1826_v51  ;;  %v817_v57 = vpop.f32.mrb[1].mxu1  ;;  %v2043_v51 = vld [vmem:[#allocation9 + $0x134] ss:$8 sps:$4 sm:$0xff]   ;;  %v2044_v55 = vld [vmem:[#allocation9 + $0x140] ss:$8 sps:$4 sm:$0xff]  }
 0x2ba   : > { %v1847_v58 = vpop.f32.mrb[2].mxu1  ;;  %v2052_v57 = vld [vmem:[#allocation9 + $0x164] ss:$8 sps:$4 sm:$0xff]  }
 0x2bb   : > { %v820_v60 = vpop.f32.mrb[3].mxu1  ;;  %v2050_v58 = vld [vmem:[#allocation9 + $0x160] ss:$8 sps:$4 sm:$0xff]  }
 0x2bc   : > { %v821_v61 = vadd.f32 %v820_v60, %v723_v54  ;;  %v2046_v54 = vld [vmem:[#allocation9 + $0x144] ss:$8 sps:$4 sm:$0xff]   ;;  %v2055_v60 = vld [vmem:[#allocation9 + $0x174] ss:$8 sps:$4 sm:$0xff]  }
 0x2d1   : > { %v1866_v62 = vpop.f32.mrb[4].mxu0 }
 0x2d2   : > { %v948_v1 = vadd.f32 %v1866_v62, %v826_v56  ;;  %v931_v2 = vpop.f32.mrb[5].mxu0  ;;  %v2049_v56 = vld [vmem:[#allocation9 + $0x154] ss:$8 sps:$4 sm:$0xff]  }
 0x2d3   : > { %v1867_v3 = vpop.f32.mrb[6].mxu0 }
 0x2d4   : > { %v959_v4 = vadd.f32 %v1712_v63, %v948_v1  ;;  %v934_v5 = vpop.f32.mrb[7].mxu0 }
 0x2d5   : > { %v947_v6 = vadd.f32 %v934_v5, %v821_v61  ;;  %v2053_v61 = vld [vmem:[#allocation9 + $0x170] ss:$8 sps:$4 sm:$0xff]  }
 0x2d6   : > { %v967_v7 = vmul.f32 0.044715, %v959_v4  ;;  %v963_v20 = vmul.f32 0.5, %v959_v4 }
 0x2d7   : > { %v958_v8 = vadd.f32 %v1712_v63, %v947_v6 }
 0x2d8   : > { %v971_v9 = vmul.f32 %v967_v7, %v959_v4 }
 0x2d9   : > { %v966_v10 = vmul.f32 0.044715, %v958_v8  ;;  %v962_v25 = vmul.f32 0.5, %v958_v8 }
 0x2da   : > { %v975_v11 = vmul.f32 %v971_v9, %v959_v4 }
 0x2db   : > { %v970_v12 = vmul.f32 %v966_v10, %v958_v8 }
 0x2dc   : > { %v979_v13 = vadd.f32 %v975_v11, %v959_v4 }
 0x2dd   : > { %v974_v15 = vmul.f32 %v970_v12, %v958_v8 }
 0x2de   : > { %v983_v16 = vmul.f32 0.7978846, %v979_v13 }
 0x2df   : > { %v978_v17 = vadd.f32 %v974_v15, %v958_v8 }
 0x2e0   : > { %2060 = vtanh.f32 %v983_v16 }
 0x2e1   : > { %v982_v18 = vmul.f32 0.7978846, %v978_v17 }
 0x2e3   : > { %2062 = vtanh.f32 %v982_v18 }
 0x2ea   : > { %v2061_v19 = vpop.eup %2060 }
 0x2eb   : > { %v991_v21 = vadd.f32 1.0, %v2061_v19 }
 0x2ed   : > { %v2063_v23 = vpop.eup %2062  ;;  %v995_v24 = vmul.f32 %v991_v21, %v963_v20  ;;  %v1484_v20 = vshrl.u32 %v482_v0, 7 }
 0x2ee   : > { %v990_v26 = vadd.f32 1.0, %v2063_v23 }
 0x2ef   : > { %v1006_v27 = vadd.f32 %v1713_v22, %v995_v24  ;;  %v1485_v21 = vsub.s32 0, %v1484_v20  ;;  %v1489_v23 = vsub.s32 1, %v1484_v20 }
 0x2f0   : > { %v994_v28 = vmul.f32 %v990_v26, %v962_v25  ;;  %v1775_v25 = vld [vmem:[%s2525_s26] sm:$0xff]   ;;  %s1523_s26 = sshll.u32 %s2556_s1, 4  ;;  %s2623_s26 = int_to_ptr.vmem [resolvable:$true] %s1523_s26 }
 0x2f1   : > { %v1013_v29 = vpack.c.bf16 %v2272_v49, %v1006_v27  ;;  %s2174_s29 = scalar_lea.vmem %s2623_s26, 256  ;;  %p2181_p10 = scmp.lt.s32.totalorder %s2623_s26, %s2179_s12 }
 0x2f2   : > { %v1005_v30 = vadd.f32 %v1713_v22, %v994_v28  ;;  %v1481_v22 = vld [vmem:[%s2718_s24] sm:$0x3]  ;;  %p2175_p2 = scmp.ne.s32.totalorder %s2623_s26, %s2174_s29  ;;  %p2182_p3 = scmp.lt.s32.totalorder %s2180_s28, %s2174_s29 }
 0x2f3   : > { %v1022_v32 = vshrl.u32 %v1013_v29, 16  ;;  %v1025_v36 = vshll.u32 %v1013_v29, 16  ;;  %v1486_v27 = vrot.slane %v1481_v22, %v1485_v21 }
 0x2f4   : > { %v1012_v33 = vpack.c.bf16 %v1005_v30, %v2272_v49  ;;  %p2176_p12 = pnand %p2175_p2, %p2721_p8  ;;  %p2183_p5 = por %p2182_p3, %p2181_p10 }
 0x2f5   : > { %v1024_v35 = vrot.slane %v1022_v32, 7  ;;  %v1034_v49 = vrot.slane %v1025_v36, 1 }
 0x2f6   : > { %1186 = vmatmul.mubr.bf16.vlgmr.msra.gmra.mrb[4].mxu1 %v1012_v33  ;;  %v1015_v37 = vshrl.u32 %v1012_v33, 16  ;;  %v1018_v39 = vshll.u32 %v1012_v33, 16  ;;  %p2177_p1 = pneg %p2176_p12 }
 0x2f7   : > { %1429 = vmatpush1.bf16.msra.mxu1 %v2029_v31  ;;  %1193 = vmatprep.mubr.bf16.mxu1 %v2273_v38  ;;  %v1027_v41 = vor.u32 %v1025_v36, %v1024_v35  ;;  %v1036_v62 = vor.u32 %v1034_v49, %v1022_v32  ;;  %v1776_v31 = vunpack.c.l.bf16 %v1775_v25 }
 0x2f8   : > { %1430 = vmatprep.subr.bf16.mxu1 %v2037_v34  ;;  %v1017_v42 = vrot.slane %v1015_v37, 7  ;;  %v1032_v43 = vrot.slane %v1018_v39, 1  ;;  %p2184_p9 = pnand %p2183_p5, %p2177_p1 }
 0x2f9   : > { %v1039_v63 = vsel %vm2581_vm6, %v1036_v62, 0 }
 0x2fa   : > { %v1020_v45 = vor.u32 %v1018_v39, %v1017_v42  ;;  %v1028_v46 = vsel %vm573_vm1, %v1017_v42, %v1027_v41  ;;  %v1033_v47 = vor.u32 %v1032_v43, %v1015_v37 }
 0x2fb   : > { %1431 = vmatpush1.bf16.msra.mxu1 %v2035_v40  ;;  %v1777_v40 = vunpack.c.h.bf16 %v1775_v25 }
 0x2fc   : > { %v1031_v50 = vsel %vm2572_vm3, 0, %v1020_v45  ;;  %1432 = vmatprep.subr.bf16.mxu1 %v2040_v44  ;;  %v1035_v52 = vsel %vm594_vm4, %v1033_v47, %v1034_v49 }
 0x2fd   : > { %1315 = vmatmul.mubr.bf16.vlgmr.msra.gmra.mrb[8].mxu0 %v1031_v50 }
 0x2fe   : > { %1194 = vmatmul.mubr.bf16.gmra.mrb[8].mxu1 %v1013_v29  ;;  %1322 = vmatprep.mubr.bf16.mxu0 %v2273_v38  ;;  %v1490_v29 = vrot.slane %v1481_v22, %v1489_v23 }
 0x2ff   : > { %1433 = vmatpush1.bf16.msra.mxu1 %v2038_v48  ;;  %1460 = vmatprep.mubr.bf16.mxu1 %v2273_v38 }
 0x300   : > { %1434 = vmatprep.subr.bf16.mxu1 %v2043_v51 }
 0x303   : > { %1435 = vmatpush1.bf16.msra.mxu1 %v2041_v53 }
 0x304   : > { %1436 = vmatprep.subr.bf16.mxu1 %v2046_v54 }
 0x305   : > { %1323 = vmatmul.mubr.bf16.gmra.mrb[12].mxu0 %v1028_v46 }
 0x307   : > { %1437 = vmatpush1.bf16.msra.mxu1 %v2044_v55 }
 0x308   : > { %1438 = vmatprep.subr.bf16.mxu1 %v2049_v56 }
 0x30b   : > { %1439 = vmatpush1.bf16.msra.mxu1 %v2047_v59 }
 0x30c   : > { %1440 = vmatprep.subr.bf16.mxu1 %v2052_v57 }
 0x30f   : > { %1441 = vmatpush1.bf16.msra.mxu1 %v2050_v58 }
 0x310   : > { %1442 = vmatprep.subr.bf16.mxu1 %v2055_v60 }
 0x313   : > { %1443 = vmatpush1.bf16.msra.mxu1 %v2053_v61 }
 0x316   : > { %1461 = vmatmul.mubr.bf16.vlgmr.msra.gmra.mrb[12].mxu1 %v1035_v52 }
 0x317   : > { %1468 = vmatprep.mubr.bf16.mxu1 %v2273_v38 }
 0x31e   : > { %1469 = vmatmul.mubr.bf16.gmra.mrb[16].mxu1 %v1039_v63 }
 0x3c9   : > { %v1187_v1 = vpop.f32.mrb[4].mxu1 }
 0x3ca   : > { %v1188_v2 = vpop.f32.mrb[5].mxu1 }
 0x3cb   : > { %v1189_v3 = vpop.f32.mrb[6].mxu1 }
 0x3cc   : > { %v1191_v4 = vpop.f32.mrb[7].mxu1 }
 0x3d0   : > { %v1316_v5 = vpop.f32.mrb[8].mxu0 }
 0x3d1   : > { %v1195_v6 = vpop.f32.mrb[8].mxu1  ;;  %v1317_v7 = vpop.f32.mrb[9].mxu0 }
 0x3d2   : > { %v1197_v8 = vpop.f32.mrb[9].mxu1  ;;  %v1318_v9 = vpop.f32.mrb[10].mxu0 }
 0x3d3   : > { %v1319_v10 = vadd.f32 %v1318_v9, %v1189_v3  ;;  %v1199_v11 = vpop.f32.mrb[10].mxu1  ;;  %v1320_v12 = vpop.f32.mrb[11].mxu0 }
 0x3d4   : > { %v1321_v13 = vadd.f32 %v1320_v12, %v1191_v4  ;;  %v1200_v38 = vpop.f32.mrb[11].mxu1 }
 0x3d8   : > { %v1324_v15 = vpop.f32.mrb[12].mxu0 }
 0x3d9   : > { %v1325_v16 = vadd.f32 %v1324_v15, %v1195_v6  ;;  %v1326_v14 = vpop.f32.mrb[13].mxu0 }
 0x3da   : > { %v1327_v17 = vadd.f32 %v1326_v14, %v1197_v8  ;;  %v1328_v18 = vpop.f32.mrb[14].mxu0 }
 0x3db   : > { %v1329_v19 = vpop.f32.mrb[15].mxu0 }
 0x3e9   : > { %v1462_v24 = vpop.f32.mrb[12].mxu1 }
 0x3ea   : > { %v1463_v26 = vpop.f32.mrb[13].mxu1 }
 0x3eb   : > { %v1464_v28 = vpop.f32.mrb[14].mxu1 }
 0x3ec   : > { %v1477_v30 = vadd.f32 %v1464_v28, %v1319_v10  ;;  %v1466_v32 = vpop.f32.mrb[15].mxu1 }
 0x3ed   : > { %v1478_v33 = vadd.f32 %v1466_v32, %v1321_v13 }
 0x3ee   : > { %v1493_v34 = vadd.f32 %v1486_v27, %v1477_v30 }
 0x3ef   : > { %v1494_v0 = vadd.f32 %v1490_v29, %v1478_v33 }
 0x3f0   : > { %v1501_v35 = vmul.f32 %v1776_v31, %v1493_v34 }
 0x3f1   : > { %v1470_v36 = vpop.f32.mrb[16].mxu1 }
 0x3f2   : > { %v1503_v37 = vadd.f32 %v1501_v35, %v1494_v0  ;;  %v1479_v39 = vadd.f32 %v1470_v36, %v1325_v16  ;;  %v1472_v41 = vpop.f32.mrb[17].mxu1 }
 0x3f3   : > { %v1480_v42 = vadd.f32 %v1472_v41, %v1327_v17  ;;  %v1474_v43 = vpop.f32.mrb[18].mxu1 }
 0x3f4   : > { %1505 = vst [vmem:[%s2556_s1] sm:$0xff] %v1503_v37  ;;  %v1495_v44 = vadd.f32 %v1486_v27, %v1479_v39  ;;  %v1475_v45 = vpop.f32.mrb[19].mxu1 }
 0x3f5   : > { %v1496_v46 = vadd.f32 %v1490_v29, %v1480_v42 }
 0x3f6   : > { %v1502_v47 = vmul.f32 %v1777_v40, %v1495_v44 }
 0x3f8   : > { %v1504_v49 = vadd.f32 %v1502_v47, %v1496_v46 }
 0x3fa   : > { %1506 = vst [vmem:[%s2556_s1 + $0x8] sm:$0xff] %v1504_v49 }
 0x3fb   : > { %2187 = shalt.err (!%p2184_p9)
}
 0x3fc   : > { %s2188_s20 = scalar_lea.hbm %s2621_s5, 256  ;;  %s2192_s25 = scalar_lea.hbm %s2720_s19, 512 }
 0x3fd   : > { %p2189_p11 = scmp.ne.s32.totalorder %s2621_s5, %s2188_s20  ;;  %p2193_p13 = scmp.lt.u32.totalorder %s2621_s5, %s2720_s19 }
 0x3fe   : > { %p2194_p6 = scmp.lt.u32.totalorder %s2192_s25, %s2188_s20  ;;  %p2196_p2 = scmp.lt.u32.totalorder %s2188_s20, %s2621_s5 }
 0x3ff   : > { %p2190_p0 = pnand %p2189_p11, %p2721_p8 }
 0x400   : > { %p2195_p7 = por %p2194_p6, %p2193_p13 }
 0x401   : > { %p2191_p4 = pneg %p2190_p0 }
 0x402   : > { %p2197_p12 = por %p2196_p2, %p2195_p7 }
 0x404   : > { %p2198_p1 = pnand %p2197_p12, %p2191_p4 }
 0x406   : > { %2201 = shalt.err (!%p2198_p1)
}
 0x407   : > { %s2275_s17 = smov 128   ;;  %s2276_s24 = smov 8  }
 0x408   : > { %1878 = dma.vmem_to_hbm [thread:$0]  (%p2721_p8), %s2623_s26, 256, %s2621_s5, %s1508_s7, %s2275_s17, %s2275_s17, %s2276_s24  }
 0x409 PF: > { %s2722_s18 = sld [smem:[#allocation21_spill]]  ;;  %s2723_s22 = sld [smem:[#allocation22_spill]] }
 0x40a   : > { %p2725_p3 = scmp.ge.s32.totalorder %s2262_s14, 2 }
 0x40f   : > { %s1538_s30 = sand.u32 1, %s2722_s18   ;;  %p2724_p10 = scmp.ne.s32.totalorder %s2723_s22, 0 }
 0x410   : > { %s1539_s29 = scalar_lea.sflag [#allocation6], %s1538_s30 }
 0x411   : > { %p1892_p5 = pnand %p2725_p3, %p2724_p10 }
 0x413   : > { %2237 = dma.done.wait (!%p1892_p5), %s1539_s29, 256  }
 0x414   : > { %2239 = vsyncadd (!%p1892_p5), %s1539_s29, 4294967040  ;;  %s26_s14 = sadd.s32 1, %s2262_s14   ;;  %s2726_s16 = sld [smem:[#allocation23_spill]] }
 0x415   : > { %p23_p9 = scmp.ge.s32.totalorder %s26_s14, 4   ;;  %s2727_s30 = smov %s2246_s10 }
 0x416   : > { %s2728_s10 = smov %s2250_s11  ;;  %s2729_s11 = smov %s2472_s23 }
 0x417   : > { %s2730_s12 = smov %s2258_s13  ;;  %25 = sbr.rel (!%p23_p9) target bundleno = 13 (0xd), region = 137 }
 0x41a   : > { %s2731_s13 = smov %s2726_s16 }
 0x41e   :  { %1544 = vsyncpa [#allocation5], 1 }
 0x41f   :  { %1546 = vsyncpa [#allocation5 + $0x1], 1 }
 0x420   :  { %1547 = vsyncpa [#allocation8], 1 }
 0x421   :  { %1548 = vsyncpa [#allocation6], 1 }
 0x422   :  { %1550 = vsyncpa [#allocation6 + $0x1], 1 }
 0x423   :  { %1551 = vsyncmov [#allocation3] }
 0x426   :  { %s1552_s8 = vpop.sfrf %1551 }
 0x427   :  { %p1767_p8 = scmp.ne.s32.totalorder %s1552_s8, 0 }
 0x429   :  { %1556 = shalt.err (%p1767_p8)  }
 0x42a   :  { %1558 = vsyncmov [#allocation3 + $0x1] }
 0x42d   :  { %s1559_s26 = vpop.sfrf %1558 }
 0x42e   :  { %p1768_p11 = scmp.ne.s32.totalorder %s1559_s26, 0 }
 0x430   :  { %1563 = shalt.err (%p1768_p11)  }

</bundles_post_ra>
